<compile_context>
chip_gen: v6e
topology: v6e:2x2x1
jax: 0.10.0
libtpu: 0.0.40
codegen_flags: <defaults>
</compile_context>

<pallas_src>
import jax
import jax.numpy as jnp
from jax.experimental import pallas as pl
from jax.experimental.pallas import tpu as pltpu

LANE = 128
_MAX_SINGLE_K = 2048      # collapse K grid axis when Kp fits one tile


def _ru(x, m):
    return (x + m - 1) // m * m


# --------------------------- fused matmul kernels --------------------------- #

def _make_kernel_2d(use_slope, has_residual):
    """Single-K-tile kernel: dot -> BN -> (per-lane leaky_relu) -> (+residual)."""

    def kernel(*refs):
        a_ref, b_ref, s_ref, c_ref = refs[:4]
        i = 4
        m_ref = None
        if use_slope:
            m_ref = refs[i]
            i += 1
        r_ref = None
        if has_residual:
            r_ref = refs[i]
            i += 1
        o_ref = refs[i]

        y = jnp.dot(a_ref[...], b_ref[...], preferred_element_type=jnp.float32)
        y = y * s_ref[...] + c_ref[...]                    # folded BatchNorm
        if use_slope:                                      # per-lane leaky_relu
            y = jnp.where(y >= 0.0, y, m_ref[...] * y)
        if has_residual:                                   # shortcut add (f32)
            y = y + r_ref[...].astype(jnp.float32)
        o_ref[...] = y.astype(o_ref.dtype)

    return kernel


def _make_kernel_3d(use_slope, has_residual):
    """Fallback for large K: f32 VMEM accumulator over the K grid axis."""

    def kernel(*refs):
        a_ref, b_ref, s_ref, c_ref = refs[:4]
        i = 4
        m_ref = None
        if use_slope:
            m_ref = refs[i]
            i += 1
        r_ref = None
        if has_residual:
            r_ref = refs[i]
            i += 1
        o_ref, acc_ref = refs[i], refs[i + 1]

        @pl.when(pl.program_id(2) == 0)
        def _init():
            acc_ref[...] = jnp.zeros_like(acc_ref)

        acc_ref[...] += jnp.dot(a_ref[...], b_ref[...],
                                preferred_element_type=jnp.float32)

        @pl.when(pl.program_id(2) == pl.num_programs(2) - 1)
        def _finalize():
            y = acc_ref[...] * s_ref[...] + c_ref[...]
            if use_slope:
                y = jnp.where(y >= 0.0, y, m_ref[...] * y)
            if has_residual:
                y = y + r_ref[...].astype(jnp.float32)
            o_ref[...] = y.astype(o_ref.dtype)

    return kernel


def fused_matmul(a, b, scale, bias, *, slope=None, residual=None,
                 out_dtype=jnp.bfloat16):
    """(M,K) @ (Kp,N) with fused BN / per-lane leaky_relu / residual epilogue.

    `b`, `scale`, `bias`, `slope` arrive pre-padded: Kp % 8 == 0, N % 128 == 0.
    """
    M, K = a.shape
    Kp, N = b.shape
    assert Kp >= K and Kp % 8 == 0 and N % LANE == 0
    assert scale.shape == (1, N) and bias.shape == (1, N)

    # M tile: bf16 packs 16 rows/sublane-group; >=2 M blocks keeps both v7x TCs busy.
    if M >= 2048:
        tm = 512
    elif M >= 512:
        tm = 256
    else:
        tm = _ru(max(M, 16), 16)
    Mp = _ru(M, tm)
    # N tile: 256 fills the 256-wide MXU (v6e/v7x) when N allows, else 128.
    tn = 256 if N % 256 == 0 else LANE

    if (Mp, Kp) != (M, K):
        a = jnp.pad(a, ((0, Mp - M), (0, Kp - K)))

    has_res = residual is not None
    if has_res:
        if residual.shape[1] > N:
            residual = residual[:, :N]
        if residual.shape != (Mp, N):
            residual = jnp.pad(residual, ((0, Mp - residual.shape[0]),
                                          (0, N - residual.shape[1])))
    use_slope = slope is not None

    args = [a, b, scale, bias]
    if use_slope:
        args.append(slope)
    if has_res:
        args.append(residual)

    nbytes = (sum(x.size * x.dtype.itemsize for x in args)
              + Mp * N * jnp.dtype(out_dtype).itemsize)
    cost = pl.CostEstimate(flops=2 * Mp * N * Kp, transcendentals=0,
                           bytes_accessed=nbytes)

    if Kp <= _MAX_SINGLE_K:
        # 2-D grid: single K tile, resident weights, no accumulator scratch.
        grid = (Mp // tm, N // tn)
        in_specs = [pl.BlockSpec((tm, Kp), lambda i, j: (i, 0)),   # A
                    pl.BlockSpec((Kp, tn), lambda i, j: (0, j)),   # B (resident)
                    pl.BlockSpec((1, tn), lambda i, j: (0, j)),    # BN scale
                    pl.BlockSpec((1, tn), lambda i, j: (0, j))]    # BN bias
        if use_slope:
            in_specs.append(pl.BlockSpec((1, tn), lambda i, j: (0, j)))
        if has_res:
            in_specs.append(pl.BlockSpec((tm, tn), lambda i, j: (i, j)))
        out_specs = pl.BlockSpec((tm, tn), lambda i, j: (i, j))
        kernel = _make_kernel_2d(use_slope, has_res)
        scratch = []
        dims = ("parallel", "parallel")
    else:
        # 3-D fallback: accumulate over K tiles.
        tk = next((c for c in (512, 384, 256, 128) if Kp % c == 0), Kp)
        grid = (Mp // tm, N // tn, Kp // tk)
        in_specs = [pl.BlockSpec((tm, tk), lambda i, j, k: (i, k)),
                    pl.BlockSpec((tk, tn), lambda i, j, k: (k, j)),
                    pl.BlockSpec((1, tn), lambda i, j, k: (0, j)),
                    pl.BlockSpec((1, tn), lambda i, j, k: (0, j))]
        if use_slope:
            in_specs.append(pl.BlockSpec((1, tn), lambda i, j, k: (0, j)))
        if has_res:
            in_specs.append(pl.BlockSpec((tm, tn), lambda i, j, k: (i, j)))
        out_specs = pl.BlockSpec((tm, tn), lambda i, j, k: (i, j))
        kernel = _make_kernel_3d(use_slope, has_res)
        scratch = [pltpu.VMEM((tm, tn), jnp.float32)]
        dims = ("parallel", "parallel", "arbitrary")

    out = pl.pallas_call(
        kernel,
        out_shape=jax.ShapeDtypeStruct((Mp, N), out_dtype),
        grid=grid,
        in_specs=in_specs,
        out_specs=out_specs,
        scratch_shapes=scratch,
        compiler_params=pltpu.CompilerParams(
            dimension_semantics=dims,
            vmem_limit_bytes=32 * 1024 * 1024,
        ),
        cost_estimate=cost,
    )(*args)

    if Mp != M:
        out = out[:M]
    return out


# --------------------------- im2col (K-packed) ------------------------------ #

def _im2col3x3(x):
    """x: (N,H,W,C real channels) -> (N*H*W, 9*C); stride 1, pad 1, (kh,kw,c) order."""
    # TODO(synk): the im2col slab is still materialized in HBM; folding the 9
    #             taps into the kernel via shifted-window DMAs would remove it.
    N, H, W, C = x.shape
    xp = jnp.pad(x, ((0, 0), (1, 1), (1, 1), (0, 0)))
    cols = [xp[:, i:i + H, j:j + W, :] for i in range(3) for j in range(3)]
    return jnp.concatenate(cols, axis=-1).reshape(N * H * W, 9 * C)


# --------------------------- parameter preparation -------------------------- #

def _w3x3_mat(w):
    """PyTorch (out_c, in_c, 3, 3) -> (9*in_c, out_c), row order (kh, kw, c)."""
    out_c, in_c, kh, kw = w.shape
    return jnp.transpose(w, (2, 3, 1, 0)).reshape(kh * kw * in_c, out_c)


def _fold_bn(gamma, beta, mean, var, eps=1e-5):
    s = gamma / jnp.sqrt(var + eps)
    return s, beta - mean * s


def prep_params(raw, in_planes, planes):
    """Pack weights / folded BN / slope vectors into K-packed, lane-padded operands."""
    k1, k23 = 9 * in_planes, 9 * planes
    kp1, kp23 = _ru(k1, LANE), _ru(k23, LANE)
    n_comb = _ru(2 * planes, LANE)          # conv1 + shortcut share one matmul
    n_out = _ru(planes, LANE)

    # fused conv1 (3x3) + shortcut (1x1): shortcut -> lanes [0, planes),
    # conv1 -> lanes [planes, 2*planes); shortcut taps at centre (kh,kw)=(1,1).
    w1 = _w3x3_mat(raw['conv1'])                              # (9*cin, planes)
    wsc = raw['sc_conv'].reshape(planes, in_planes).T         # (cin, planes)
    ctr = 4 * in_planes                                       # (1*3+1)*cin
    w1sc = jnp.zeros((kp1, n_comb), jnp.float32)
    w1sc = w1sc.at[ctr:ctr + in_planes, :planes].set(wsc)
    w1sc = w1sc.at[:k1, planes:2 * planes].set(w1)

    s_sc, b_sc = _fold_bn(*raw['sc_bn'])
    s_1, b_1 = _fold_bn(*raw['bn1'])
    s1sc = jnp.zeros((1, n_comb), jnp.float32)
    s1sc = s1sc.at[0, :planes].set(s_sc).at[0, planes:2 * planes].set(s_1)
    b1sc = jnp.zeros((1, n_comb), jnp.float32)
    b1sc = b1sc.at[0, :planes].set(b_sc).at[0, planes:2 * planes].set(b_1)
    m1sc = jnp.ones((1, n_comb), jnp.float32)          # slope 1.0 == identity
    m1sc = m1sc.at[0, planes:2 * planes].set(0.1)      # leaky_relu on conv1 lanes

    def pack_w(w, kp, n):
        m = _w3x3_mat(w)
        return (jnp.zeros((kp, n), jnp.float32)
                .at[:m.shape[0], :m.shape[1]].set(m).astype(jnp.bfloat16))

    def pack_bn(bn, n):
        s, b = _fold_bn(*bn)
        return (jnp.pad(s, (0, n - planes)).reshape(1, n).astype(jnp.float32),
                jnp.pad(b, (0, n - planes)).reshape(1, n).astype(jnp.float32))

    s2, b2 = pack_bn(raw['bn2'], n_out)
    s3, b3 = pack_bn(raw['bn3'], n_out)
    return {
        'w1sc': w1sc.astype(jnp.bfloat16), 's1sc': s1sc, 'b1sc': b1sc, 'm1sc': m1sc,
        'w2': pack_w(raw['conv2'], kp23, n_out), 's2': s2, 'b2': b2,
        'm2': jnp.full((1, n_out), 0.1, jnp.float32),
        'w3': pack_w(raw['conv3'], kp23, n_out), 's3': s3, 'b3': b3,
    }


# --------------------------- BasicBlockRN12 forward ------------------------- #

def basic_block_rn12_forward(p, x_nchw, *, planes):
    """PyTorch BasicBlockRN12.forward (eval mode), NCHW in / NCHW out, f32."""
    N, C, H, W = x_nchw.shape
    x = jnp.transpose(x_nchw.astype(jnp.float32), (0, 2, 3, 1)).astype(jnp.bfloat16)

    # conv1 -> bn1 -> leaky_relu(0.1)  and  shortcut (1x1 conv -> bn), one call.
    comb = fused_matmul(_im2col3x3(x), p['w1sc'], p['s1sc'], p['b1sc'],
                        slope=p['m1sc'], out_dtype=jnp.bfloat16)
    out1 = comb[:, planes:2 * planes].reshape(N, H, W, planes)

    # conv2 -> bn2 -> leaky_relu(0.1)
    out2 = fused_matmul(_im2col3x3(out1), p['w2'], p['s2'], p['b2'],
                        slope=p['m2'], out_dtype=jnp.bfloat16)
    out2 = out2[:, :planes].reshape(N, H, W, planes)

    # conv3 -> bn3, shortcut lanes of `comb` added in the epilogue (f32 add).
    out3 = fused_matmul(_im2col3x3(out2), p['w3'], p['s3'], p['b3'],
                        slope=None, residual=comb, out_dtype=jnp.float32)

    # TODO(synk): F.dropout(p=0.1) is identity under eval-mode semantics;
    #             training-mode RNG dropout / batch-stat BatchNorm not implemented.
    out = out3[:, :planes].reshape(N, H, W, planes)
    return jnp.transpose(out, (0, 3, 1, 2))                   # NHWC -> NCHW


# --------------------------- init + pure-JAX reference ---------------------- #

def init_params(key, in_planes, planes):
    ks = jax.random.split(key, 8)

    def conv_w(k, out_c, in_c, ksz):
        fan_in = in_c * ksz * ksz
        return (jax.random.normal(k, (out_c, in_c, ksz, ksz), jnp.float32)
                * jnp.sqrt(2.0 / fan_in))

    def bn_p(k, c):
        k1, k2, k3, k4 = jax.random.split(k, 4)
        return (jax.random.uniform(k1, (c,), jnp.float32, 0.5, 1.5),   # gamma
                jax.random.normal(k2, (c,), jnp.float32) * 0.1,        # beta
                jax.random.normal(k3, (c,), jnp.float32) * 0.1,        # running mean
                jax.random.uniform(k4, (c,), jnp.float32, 0.5, 1.5))   # running var

    return {'conv1': conv_w(ks[0], planes, in_planes, 3), 'bn1': bn_p(ks[1], planes),
            'conv2': conv_w(ks[2], planes, planes, 3),    'bn2': bn_p(ks[3], planes),
            'conv3': conv_w(ks[4], planes, planes, 3),    'bn3': bn_p(ks[5], planes),
            'sc_conv': conv_w(ks[6], planes, in_planes, 1), 'sc_bn': bn_p(ks[7], planes)}


def reference_forward(raw, x, eps=1e-5):
    """Pure-JAX f32 reference of BasicBlockRN12.forward (eval mode)."""
    def conv(x, w, pad):
        return jax.lax.conv_general_dilated(
            x, w, window_strides=(1, 1), padding=[(pad, pad), (pad, pad)],
            dimension_numbers=('NCHW', 'OIHW', 'NCHW'))

    def bn(x, p):
        gamma, beta, mean, var = p
        s = gamma / jnp.sqrt(var + eps)
        b = beta - mean * s
        return x * s[None, :, None, None] + b[None, :, None, None]

    def lrelu(x):
        return jnp.where(x >= 0, x, 0.1 * x)

    out = lrelu(bn(conv(x, raw['conv1'], 1), raw['bn1']))
    out = lrelu(bn(conv(out, raw['conv2'], 1), raw['bn2']))
    out = bn(conv(out, raw['conv3'], 1), raw['bn3'])
    out = out + bn(conv(x, raw['sc_conv'], 0), raw['sc_bn'])
    return out   # dropout: identity in eval mode


# --------------------------- main ------------------------------------------- #

if __name__ == "__main__":
    key = jax.random.PRNGKey(0)
    k_param, k_x = jax.random.split(key)

    batch, in_planes, planes, spatial = 2, 4, 32, 16
    raw = init_params(k_param, in_planes, planes)
    prepped = prep_params(raw, in_planes, planes)
    x = jax.random.normal(k_x, (batch, in_planes, spatial, spatial), jnp.float32)

    fwd = jax.jit(lambda p, xx: basic_block_rn12_forward(p, xx, planes=planes))
    out = jax.block_until_ready(fwd(prepped, x))

    assert out.shape == (batch, planes, spatial, spatial), out.shape
    assert out.dtype == jnp.float32
    assert bool(jnp.all(jnp.isfinite(out)))

    # Sanity check against pure-JAX f32 reference (bf16 MXU inputs -> loose tol).
    ref = reference_forward(raw, x)
    err = float(jnp.max(jnp.abs(out - ref)))
    lim = 0.05 * float(jnp.max(jnp.abs(ref))) + 0.05
    assert err <= lim, (err, lim)

    print("KERNEL_OK")
</pallas_src>

<mosaic_0001>
module attributes {stable_mosaic.version = 11 : i64} {
  func.func @kernel(%arg0: i32, %arg1: i32, %arg2: memref<256x128xbf16, #tpu.memory_space<vmem>>, %arg3: memref<128x128xbf16, #tpu.memory_space<vmem>>, %arg4: memref<1x128xf32, #tpu.memory_space<vmem>>, %arg5: memref<1x128xf32, #tpu.memory_space<vmem>>, %arg6: memref<1x128xf32, #tpu.memory_space<vmem>>, %arg7: memref<256x128xbf16, #tpu.memory_space<vmem>>) attributes {dimension_semantics = [#tpu.dimension_semantics<parallel>, #tpu.dimension_semantics<parallel>], iteration_bounds = array<i64: 2, 1>, scalar_prefetch = 0 : i64, scratch_operands = 0 : i64, tpu.core_type = #tpu.core_type<tc>, window_params = [{transform_indices = @transform_0, window_bounds = array<i64: 256, 128>}, {transform_indices = @transform_1, window_bounds = array<i64: 128, 128>}, {transform_indices = @transform_2, window_bounds = array<i64: 1, 128>}, {transform_indices = @transform_3, window_bounds = array<i64: 1, 128>}, {transform_indices = @transform_4, window_bounds = array<i64: 1, 128>}, {transform_indices = @transform_5, window_bounds = array<i64: 256, 128>}]} {
    %c0 = arith.constant 0 : index
    %c0_0 = arith.constant 0 : index
    %0 = vector.load %arg2[%c0, %c0_0] : memref<256x128xbf16, #tpu.memory_space<vmem>>, vector<256x128xbf16>
    %c0_1 = arith.constant 0 : index
    %c0_2 = arith.constant 0 : index
    %1 = vector.load %arg3[%c0_1, %c0_2] : memref<128x128xbf16, #tpu.memory_space<vmem>>, vector<128x128xbf16>
    %cst = arith.constant dense<0.000000e+00> : vector<256x128xf32>
    %2 = tpu.matmul %0, %1, %cst {dimension_numbers = #tpu.dot_dimension_numbers<[1], [0], [0], [1], [0, 0, 1, 1], [], []>} : vector<256x128xbf16>, vector<128x128xbf16>, vector<256x128xf32> -> vector<256x128xf32>
    %c0_3 = arith.constant 0 : index
    %c0_4 = arith.constant 0 : index
    %3 = vector.load %arg4[%c0_3, %c0_4] : memref<1x128xf32, #tpu.memory_space<vmem>>, vector<1x128xf32>
    %4 = vector.broadcast %3 : vector<1x128xf32> to vector<256x128xf32>
    %5 = arith.mulf %2, %4 : vector<256x128xf32>
    %c0_5 = arith.constant 0 : index
    %c0_6 = arith.constant 0 : index
    %6 = vector.load %arg5[%c0_5, %c0_6] : memref<1x128xf32, #tpu.memory_space<vmem>>, vector<1x128xf32>
    %7 = vector.broadcast %6 : vector<1x128xf32> to vector<256x128xf32>
    %8 = arith.addf %5, %7 : vector<256x128xf32>
    %cst_7 = arith.constant 0.000000e+00 : f32
    %9 = vector.broadcast %cst_7 : f32 to vector<256x128xf32>
    %10 = arith.cmpf oge, %8, %9 : vector<256x128xf32>
    %c0_8 = arith.constant 0 : index
    %c0_9 = arith.constant 0 : index
    %11 = vector.load %arg6[%c0_8, %c0_9] : memref<1x128xf32, #tpu.memory_space<vmem>>, vector<1x128xf32>
    %12 = vector.broadcast %11 : vector<1x128xf32> to vector<256x128xf32>
    %13 = arith.mulf %12, %8 : vector<256x128xf32>
    %14 = arith.select %10, %8, %13 : vector<256x128xi1>, vector<256x128xf32>
    %15 = arith.truncf %14 : vector<256x128xf32> to vector<256x128xbf16>
    %c0_10 = arith.constant 0 : index
    %c0_11 = arith.constant 0 : index
    %16 = vector.load %arg7[%c0_10, %c0_11] : memref<256x128xbf16, #tpu.memory_space<vmem>>, vector<256x128xbf16>
    tpu.vector_store %arg7[%c0_10, %c0_11], %15 {strides = array<i32>} : memref<256x128xbf16, #tpu.memory_space<vmem>>, vector<256x128xbf16>,
    return
  }
  func.func @transform_0(%arg0: i32, %arg1: i32) -> (i32, i32) {
    %c0_i32 = arith.constant 0 : i32
    %c0_i32_0 = arith.constant 0 : i32
    return %arg0, %c0_i32 : i32, i32
  }
  func.func @transform_1(%arg0: i32, %arg1: i32) -> (i32, i32) {
    %c0_i32 = arith.constant 0 : i32
    %c0_i32_0 = arith.constant 0 : i32
    return %c0_i32, %arg1 : i32, i32
  }
  func.func @transform_2(%arg0: i32, %arg1: i32) -> (i32, i32) {
    %c0_i32 = arith.constant 0 : i32
    %c0_i32_0 = arith.constant 0 : i32
    return %c0_i32, %arg1 : i32, i32
  }
  func.func @transform_3(%arg0: i32, %arg1: i32) -> (i32, i32) {
    %c0_i32 = arith.constant 0 : i32
    %c0_i32_0 = arith.constant 0 : i32
    return %c0_i32, %arg1 : i32, i32
  }
  func.func @transform_4(%arg0: i32, %arg1: i32) -> (i32, i32) {
    %c0_i32 = arith.constant 0 : i32
    %c0_i32_0 = arith.constant 0 : i32
    return %c0_i32, %arg1 : i32, i32
  }
  func.func @transform_5(%arg0: i32, %arg1: i32) -> (i32, i32) {
    %c0_i32 = arith.constant 0 : i32
    return %arg0, %arg1 : i32, i32
  }
}

module attributes {stable_mosaic.version = 11 : i64} {
  func.func @kernel(%arg0: i32, %arg1: i32, %arg2: memref<256x384xbf16, #tpu.memory_space<vmem>>, %arg3: memref<384x128xbf16, #tpu.memory_space<vmem>>, %arg4: memref<1x128xf32, #tpu.memory_space<vmem>>, %arg5: memref<1x128xf32, #tpu.memory_space<vmem>>, %arg6: memref<1x128xf32, #tpu.memory_space<vmem>>, %arg7: memref<256x128xbf16, #tpu.memory_space<vmem>>) attributes {dimension_semantics = [#tpu.dimension_semantics<parallel>, #tpu.dimension_semantics<parallel>], iteration_bounds = array<i64: 2, 1>, scalar_prefetch = 0 : i64, scratch_operands = 0 : i64, tpu.core_type = #tpu.core_type<tc>, window_params = [{transform_indices = @transform_0, window_bounds = array<i64: 256, 384>}, {transform_indices = @transform_1, window_bounds = array<i64: 384, 128>}, {transform_indices = @transform_2, window_bounds = array<i64: 1, 128>}, {transform_indices = @transform_3, window_bounds = array<i64: 1, 128>}, {transform_indices = @transform_4, window_bounds = array<i64: 1, 128>}, {transform_indices = @transform_5, window_bounds = array<i64: 256, 128>}]} {
    %c0 = arith.constant 0 : index
    %c0_0 = arith.constant 0 : index
    %0 = vector.load %arg2[%c0, %c0_0] : memref<256x384xbf16, #tpu.memory_space<vmem>>, vector<256x384xbf16>
    %c0_1 = arith.constant 0 : index
    %c0_2 = arith.constant 0 : index
    %1 = vector.load %arg3[%c0_1, %c0_2] : memref<384x128xbf16, #tpu.memory_space<vmem>>, vector<384x128xbf16>
    %cst = arith.constant dense<0.000000e+00> : vector<256x128xf32>
    %2 = tpu.matmul %0, %1, %cst {dimension_numbers = #tpu.dot_dimension_numbers<[1], [0], [0], [1], [0, 0, 1, 1], [], []>} : vector<256x384xbf16>, vector<384x128xbf16>, vector<256x128xf32> -> vector<256x128xf32>
    %c0_3 = arith.constant 0 : index
    %c0_4 = arith.constant 0 : index
    %3 = vector.load %arg4[%c0_3, %c0_4] : memref<1x128xf32, #tpu.memory_space<vmem>>, vector<1x128xf32>
    %4 = vector.broadcast %3 : vector<1x128xf32> to vector<256x128xf32>
    %5 = arith.mulf %2, %4 : vector<256x128xf32>
    %c0_5 = arith.constant 0 : index
    %c0_6 = arith.constant 0 : index
    %6 = vector.load %arg5[%c0_5, %c0_6] : memref<1x128xf32, #tpu.memory_space<vmem>>, vector<1x128xf32>
    %7 = vector.broadcast %6 : vector<1x128xf32> to vector<256x128xf32>
    %8 = arith.addf %5, %7 : vector<256x128xf32>
    %cst_7 = arith.constant 0.000000e+00 : f32
    %9 = vector.broadcast %cst_7 : f32 to vector<256x128xf32>
    %10 = arith.cmpf oge, %8, %9 : vector<256x128xf32>
    %c0_8 = arith.constant 0 : index
    %c0_9 = arith.constant 0 : index
    %11 = vector.load %arg6[%c0_8, %c0_9] : memref<1x128xf32, #tpu.memory_space<vmem>>, vector<1x128xf32>
    %12 = vector.broadcast %11 : vector<1x128xf32> to vector<256x128xf32>
    %13 = arith.mulf %12, %8 : vector<256x128xf32>
    %14 = arith.select %10, %8, %13 : vector<256x128xi1>, vector<256x128xf32>
    %15 = arith.truncf %14 : vector<256x128xf32> to vector<256x128xbf16>
    %c0_10 = arith.constant 0 : index
    %c0_11 = arith.constant 0 : index
    %16 = vector.load %arg7[%c0_10, %c0_11] : memref<256x128xbf16, #tpu.memory_space<vmem>>, vector<256x128xbf16>
    tpu.vector_store %arg7[%c0_10, %c0_11], %15 {strides = array<i32>} : memref<256x128xbf16, #tpu.memory_space<vmem>>, vector<256x128xbf16>,
    return
  }
  func.func @transform_0(%arg0: i32, %arg1: i32) -> (i32, i32) {
    %c0_i32 = arith.constant 0 : i32
    %c0_i32_0 = arith.constant 0 : i32
    return %arg0, %c0_i32 : i32, i32
  }
  func.func @transform_1(%arg0: i32, %arg1: i32) -> (i32, i32) {
    %c0_i32 = arith.constant 0 : i32
    %c0_i32_0 = arith.constant 0 : i32
    return %c0_i32, %arg1 : i32, i32
  }
  func.func @transform_2(%arg0: i32, %arg1: i32) -> (i32, i32) {
    %c0_i32 = arith.constant 0 : i32
    %c0_i32_0 = arith.constant 0 : i32
    return %c0_i32, %arg1 : i32, i32
  }
  func.func @transform_3(%arg0: i32, %arg1: i32) -> (i32, i32) {
    %c0_i32 = arith.constant 0 : i32
    %c0_i32_0 = arith.constant 0 : i32
    return %c0_i32, %arg1 : i32, i32
  }
  func.func @transform_4(%arg0: i32, %arg1: i32) -> (i32, i32) {
    %c0_i32 = arith.constant 0 : i32
    %c0_i32_0 = arith.constant 0 : i32
    return %c0_i32, %arg1 : i32, i32
  }
  func.func @transform_5(%arg0: i32, %arg1: i32) -> (i32, i32) {
    %c0_i32 = arith.constant 0 : i32
    return %arg0, %arg1 : i32, i32
  }
}

module attributes {stable_mosaic.version = 11 : i64} {
  func.func @kernel(%arg0: i32, %arg1: i32, %arg2: memref<256x384xbf16, #tpu.memory_space<vmem>>, %arg3: memref<384x128xbf16, #tpu.memory_space<vmem>>, %arg4: memref<1x128xf32, #tpu.memory_space<vmem>>, %arg5: memref<1x128xf32, #tpu.memory_space<vmem>>, %arg6: memref<256x128xbf16, #tpu.memory_space<vmem>>, %arg7: memref<256x128xf32, #tpu.memory_space<vmem>>) attributes {dimension_semantics = [#tpu.dimension_semantics<parallel>, #tpu.dimension_semantics<parallel>], iteration_bounds = array<i64: 2, 1>, scalar_prefetch = 0 : i64, scratch_operands = 0 : i64, tpu.core_type = #tpu.core_type<tc>, window_params = [{transform_indices = @transform_0, window_bounds = array<i64: 256, 384>}, {transform_indices = @transform_1, window_bounds = array<i64: 384, 128>}, {transform_indices = @transform_2, window_bounds = array<i64: 1, 128>}, {transform_indices = @transform_3, window_bounds = array<i64: 1, 128>}, {transform_indices = @transform_4, window_bounds = array<i64: 256, 128>}, {transform_indices = @transform_5, window_bounds = array<i64: 256, 128>}]} {
    %c0 = arith.constant 0 : index
    %c0_0 = arith.constant 0 : index
    %0 = vector.load %arg2[%c0, %c0_0] : memref<256x384xbf16, #tpu.memory_space<vmem>>, vector<256x384xbf16>
    %c0_1 = arith.constant 0 : index
    %c0_2 = arith.constant 0 : index
    %1 = vector.load %arg3[%c0_1, %c0_2] : memref<384x128xbf16, #tpu.memory_space<vmem>>, vector<384x128xbf16>
    %cst = arith.constant dense<0.000000e+00> : vector<256x128xf32>
    %2 = tpu.matmul %0, %1, %cst {dimension_numbers = #tpu.dot_dimension_numbers<[1], [0], [0], [1], [0, 0, 1, 1], [], []>} : vector<256x384xbf16>, vector<384x128xbf16>, vector<256x128xf32> -> vector<256x128xf32>
    %c0_3 = arith.constant 0 : index
    %c0_4 = arith.constant 0 : index
    %3 = vector.load %arg4[%c0_3, %c0_4] : memref<1x128xf32, #tpu.memory_space<vmem>>, vector<1x128xf32>
    %4 = vector.broadcast %3 : vector<1x128xf32> to vector<256x128xf32>
    %5 = arith.mulf %2, %4 : vector<256x128xf32>
    %c0_5 = arith.constant 0 : index
    %c0_6 = arith.constant 0 : index
    %6 = vector.load %arg5[%c0_5, %c0_6] : memref<1x128xf32, #tpu.memory_space<vmem>>, vector<1x128xf32>
    %7 = vector.broadcast %6 : vector<1x128xf32> to vector<256x128xf32>
    %8 = arith.addf %5, %7 : vector<256x128xf32>
    %c0_7 = arith.constant 0 : index
    %c0_8 = arith.constant 0 : index
    %9 = vector.load %arg6[%c0_7, %c0_8] : memref<256x128xbf16, #tpu.memory_space<vmem>>, vector<256x128xbf16>
    %10 = arith.extf %9 : vector<256x128xbf16> to vector<256x128xf32>
    %11 = arith.addf %8, %10 : vector<256x128xf32>
    %c0_9 = arith.constant 0 : index
    %c0_10 = arith.constant 0 : index
    %12 = vector.load %arg7[%c0_9, %c0_10] : memref<256x128xf32, #tpu.memory_space<vmem>>, vector<256x128xf32>
    tpu.vector_store %arg7[%c0_9, %c0_10], %11 {strides = array<i32>} : memref<256x128xf32, #tpu.memory_space<vmem>>, vector<256x128xf32>,
    return
  }
  func.func @transform_0(%arg0: i32, %arg1: i32) -> (i32, i32) {
    %c0_i32 = arith.constant 0 : i32
    %c0_i32_0 = arith.constant 0 : i32
    return %arg0, %c0_i32 : i32, i32
  }
  func.func @transform_1(%arg0: i32, %arg1: i32) -> (i32, i32) {
    %c0_i32 = arith.constant 0 : i32
    %c0_i32_0 = arith.constant 0 : i32
    return %c0_i32, %arg1 : i32, i32
  }
  func.func @transform_2(%arg0: i32, %arg1: i32) -> (i32, i32) {
    %c0_i32 = arith.constant 0 : i32
    %c0_i32_0 = arith.constant 0 : i32
    return %c0_i32, %arg1 : i32, i32
  }
  func.func @transform_3(%arg0: i32, %arg1: i32) -> (i32, i32) {
    %c0_i32 = arith.constant 0 : i32
    %c0_i32_0 = arith.constant 0 : i32
    return %c0_i32, %arg1 : i32, i32
  }
  func.func @transform_4(%arg0: i32, %arg1: i32) -> (i32, i32) {
    %c0_i32 = arith.constant 0 : i32
    return %arg0, %arg1 : i32, i32
  }
  func.func @transform_5(%arg0: i32, %arg1: i32) -> (i32, i32) {
    %c0_i32 = arith.constant 0 : i32
    return %arg0, %arg1 : i32, i32
  }
}

</mosaic_0001>

<bundles_post_ra>
// kernel: _lambda_.3
= control target key start
LH: loop header
LB: loop body
LE: loop exit
PB: predicated region body
PF: predicated region fallthrough
CT: control target
= control target key end

     0   :  { %s1519_s18 = smov 0   ;;  %s1521_s19 = smov 0   ;;  %s1732_s0 = inlined_call_operand.vmem [shape: bf16[512,128], index: 0, kind: input, shape index: {}]   ;;  %s1733_s1 = inlined_call_operand.vmem [shape: bf16[128,128], index: 1, kind: input, shape index: {}]   ;;  %s1734_s2 = inlined_call_operand.vmem [shape: f32[1,128], index: 2, kind: input, shape index: {}]   ;;  %s1735_s3 = inlined_call_operand.vmem [shape: f32[1,128], index: 3, kind: input, shape index: {}]   ;;  %s1736_s4 = inlined_call_operand.vmem [shape: f32[1,128], index: 4, kind: input, shape index: {}]   ;;  %s1737_s5 = inlined_call_operand.vmem [shape: bf16[512,128], index: 5, kind: output, shape index: {}]  }
   0x1   :  { %s1523_s20 = smov 0  }
   0x2 LB: > { %s27_s21 = sadd.s32 1, %s1483_s19  ;;  %p1136_p0 = scmp.ge.s32.totalorder %s1487_s20, 1  ;;  %s1487_s20 = sphi %s1523_s20, %s15_s20   ;;  %s1483_s19 = sphi %s1521_s19, %s1739_s19   ;;  %s1479_s18 = sphi %s1519_s18, %s1738_s18  }
   0x3   : > { %p29_p1 = scmp.ge.s32.totalorder %s27_s21, 2  ;;  %p235_p2 = scmp.lt.s32.totalorder %s1487_s20, 3 }
   0x5   : > { %s1741_s21 = smov (%p29_p1, %s27_s21), 0  ;;  %p236_p3 = pnand %p1136_p0, %p235_p2 }
   0x6   : > { %s1137_s24 = sshll.u32 (!%p236_p3), %s1479_s18, 5 }
   0x7   : > { %239 = sbr.rel (%p236_p3) target bundleno = 290 (0x122), region = 40  ;;  %p280_p4 = scmp.lt.s32.totalorder (!%p236_p3), %s1137_s24, 63 }
   0xc   : > { %v1441_v0 = vld [vmem:[%s1733_s1 + $0x38] sm:$0xff]   ;;  %v1442_v1 = vld [vmem:[%s1733_s1 + $0x30] sm:$0xff]   ;;  %s1743_s24 = smov (!%p280_p4, %s1137_s24), 63  ;;  %v1443_v2 = vld [vmem:[%s1733_s1 + $0x28] sm:$0xff]  }
   0xd   : > { %1353 = vmatprep.subr.bf16.mxu0 %v1441_v0  ;;  %1401 = vmatprep.subr.bf16.mxu1 %v1441_v0  ;;  %s1138_s29 = sshll.u32 %s1743_s24, 2  ;;  %v1444_v3 = vld [vmem:[%s1733_s1 + $0x20] sm:$0xff]   ;;  %v1445_v6 = vld [vmem:[%s1733_s1 + $0x18] sm:$0xff]   ;;  %v1446_v7 = vld [vmem:[%s1733_s1 + $0x10] sm:$0xff]  }
   0xe   : > { %1354 = vmatpush3.bf16.msra.mxu0 %v1441_v0  ;;  %1409 = vmatpush3.bf16.msra.mxu1 %v1441_v0  ;;  %s1554_s7 = scalar_lea.vmem %s1732_s0, %s1138_s29  ;;  %v1447_v8 = vld [vmem:[%s1733_s1 + $0x8] sm:$0xff]   ;;  %v1448_v9 = vld [vmem:[%s1733_s1] sm:$0xff]   ;;  %s1633_s6 = scalar_lea.vmem %s1737_s5, %s1138_s29 }
   0xf   : > { %1355 = vmatprep.subr.bf16.mxu0 %v1442_v1  ;;  %1402 = vmatprep.subr.bf16.mxu1 %v1442_v1  ;;  %v1449_v4 = vld [vmem:[%s1554_s7] sm:$0xff]   ;;  %v1451_v10 = vld [vmem:[%s1554_s7 + $0x8] sm:$0xff]   ;;  %v1453_v12 = vld [vmem:[%s1554_s7 + $0x10] sm:$0xff]  }
  0x10   : > { %v1450_v5 = vld [vmem:[%s1554_s7 + $0x40] sm:$0xff]   ;;  %1369 = vmatprep.mubr.bf16.mxu0 %v1449_v4  ;;  %v1452_v11 = vld [vmem:[%s1554_s7 + $0x48] sm:$0xff]   ;;  %v1454_v13 = vld [vmem:[%s1554_s7 + $0x50] sm:$0xff]  }
  0x11   : > { %1385 = vmatprep.mubr.bf16.mxu1 %v1450_v5  ;;  %v1455_v14 = vld [vmem:[%s1554_s7 + $0x18] sm:$0xff]   ;;  %v1457_v16 = vld [vmem:[%s1554_s7 + $0x20] sm:$0xff]   ;;  %v1459_v18 = vld [vmem:[%s1554_s7 + $0x28] sm:$0xff]  }
  0x12   : > { %1356 = vmatpush3.bf16.msra.mxu0 %v1442_v1  ;;  %1410 = vmatpush3.bf16.msra.mxu1 %v1442_v1  ;;  %v1456_v15 = vld [vmem:[%s1554_s7 + $0x58] sm:$0xff]   ;;  %v1458_v17 = vld [vmem:[%s1554_s7 + $0x60] sm:$0xff]   ;;  %v1460_v19 = vld [vmem:[%s1554_s7 + $0x68] sm:$0xff]  }
  0x13   : > { %1357 = vmatprep.subr.bf16.mxu0 %v1443_v2  ;;  %1403 = vmatprep.subr.bf16.mxu1 %v1443_v2  ;;  %v1461_v20 = vld [vmem:[%s1554_s7 + $0x30] sm:$0xff]   ;;  %v1463_v22 = vld [vmem:[%s1554_s7 + $0x38] sm:$0xff]   ;;  %v1590_v24 = vld [vmem:[%s1734_s2] ss:$0 sm:$0xff] }
  0x14   : > { %v1462_v21 = vld [vmem:[%s1554_s7 + $0x70] sm:$0xff]   ;;  %v1464_v23 = vld [vmem:[%s1554_s7 + $0x78] sm:$0xff]   ;;  %v1595_v26 = vld [vmem:[%s1735_s3] ss:$0 sm:$0xff] }
  0x15   : > { %v1602_v30 = vld [vmem:[%s1736_s4] ss:$0 sm:$0xff] }
  0x16   : > { %1358 = vmatpush3.bf16.msra.mxu0 %v1443_v2  ;;  %1411 = vmatpush3.bf16.msra.mxu1 %v1443_v2 }
  0x17   : > { %1359 = vmatprep.subr.bf16.mxu0 %v1444_v3  ;;  %1404 = vmatprep.subr.bf16.mxu1 %v1444_v3 }
  0x1a   : > { %1360 = vmatpush3.bf16.msra.mxu0 %v1444_v3  ;;  %1412 = vmatpush3.bf16.msra.mxu1 %v1444_v3 }
  0x1b   : > { %1361 = vmatprep.subr.bf16.mxu0 %v1445_v6  ;;  %1405 = vmatprep.subr.bf16.mxu1 %v1445_v6 }
  0x1e   : > { %1362 = vmatpush3.bf16.msra.mxu0 %v1445_v6  ;;  %1413 = vmatpush3.bf16.msra.mxu1 %v1445_v6 }
  0x1f   : > { %1363 = vmatprep.subr.bf16.mxu0 %v1446_v7  ;;  %1406 = vmatprep.subr.bf16.mxu1 %v1446_v7 }
  0x22   : > { %1364 = vmatpush3.bf16.msra.mxu0 %v1446_v7  ;;  %1414 = vmatpush3.bf16.msra.mxu1 %v1446_v7 }
  0x23   : > { %1365 = vmatprep.subr.bf16.mxu0 %v1447_v8  ;;  %1407 = vmatprep.subr.bf16.mxu1 %v1447_v8 }
  0x26   : > { %1366 = vmatpush3.bf16.msra.mxu0 %v1447_v8  ;;  %1415 = vmatpush3.bf16.msra.mxu1 %v1447_v8 }
  0x27   : > { %1367 = vmatprep.subr.bf16.mxu0 %v1448_v9  ;;  %1408 = vmatprep.subr.bf16.mxu1 %v1448_v9 }
  0x2a   : > { %1368 = vmatpush3.bf16.msra.mxu0 %v1448_v9  ;;  %1416 = vmatpush3.bf16.msra.mxu1 %v1448_v9 }
  0x2d   : > { %1370 = vmatmul.mubr.bf16.vlgmr.msra.gmra.mxu0 %v1451_v10  ;;  %1386 = vmatmul.mubr.bf16.vlgmr.msra.gmra.mxu1 %v1452_v11 }
  0x2e   : > { %1373 = vmatprep.mubr.bf16.mxu0 %v1453_v12  ;;  %1389 = vmatprep.mubr.bf16.mxu1 %v1454_v13 }
  0x35   : > { %1374 = vmatmul.mubr.bf16.gmra.mxu0 %v1455_v14  ;;  %1390 = vmatmul.mubr.bf16.gmra.mxu1 %v1456_v15 }
  0x36   : > { %1377 = vmatprep.mubr.bf16.mxu0 %v1457_v16  ;;  %1393 = vmatprep.mubr.bf16.mxu1 %v1458_v17 }
  0x3d   : > { %1378 = vmatmul.mubr.bf16.gmra.mxu0 %v1459_v18  ;;  %1394 = vmatmul.mubr.bf16.gmra.mxu1 %v1460_v19 }
  0x3e   : > { %1381 = vmatprep.mubr.bf16.mxu0 %v1461_v20  ;;  %1397 = vmatprep.mubr.bf16.mxu1 %v1462_v21 }
  0x45   : > { %1382 = vmatmul.mubr.bf16.gmra.mxu0 %v1463_v22  ;;  %1398 = vmatmul.mubr.bf16.gmra.mxu1 %v1464_v23 }
  0xed   : > { %v1371_v25 = vpop.f32.mrf.mxu0  ;;  %v1387_v27 = vpop.f32.mrf.mxu1 }
  0xee   : > { %v670_v28 = vmul.f32 %v1371_v25, %v1590_v24  ;;  %v686_v29 = vmul.f32 %v1387_v27, %v1590_v24 }
  0xef   : > { %v534_v31 = vpop.f32.mrf.mxu0  ;;  %v598_v32 = vpop.f32.mrf.mxu1 }
  0xf0   : > { %v709_v33 = vadd.f32 %v1595_v26, %v670_v28  ;;  %v725_v34 = vadd.f32 %v1595_v26, %v686_v29  ;;  %v668_v35 = vmul.f32 %v1590_v24, %v534_v31  ;;  %v684_v36 = vmul.f32 %v1590_v24, %v598_v32 }
  0xf1   : > { %v1372_v37 = vpop.f32.mrf.mxu0  ;;  %v1388_v38 = vpop.f32.mrf.mxu1 }
  0xf2   : > { %vm741_vm0 = vcmp.ge.f32.partialorder %v709_v33, 0.0  ;;  %v780_v39 = vmul.f32 %v1602_v30, %v709_v33  ;;  %vm757_vm1 = vcmp.ge.f32.partialorder %v725_v34, 0.0  ;;  %v796_v40 = vmul.f32 %v1602_v30, %v725_v34 }
  0xf3   : > { %v707_v41 = vadd.f32 %v1595_v26, %v668_v35  ;;  %v723_v42 = vadd.f32 %v1595_v26, %v684_v36  ;;  %v671_v43 = vmul.f32 %v1372_v37, %v1590_v24  ;;  %v687_v44 = vmul.f32 %v1388_v38, %v1590_v24  ;;  %v537_v45 = vpop.f32.mrf.mxu0  ;;  %v601_v46 = vpop.f32.mrf.mxu1 }
  0xf4   : > { %v812_v47 = vsel %vm741_vm0, %v709_v33, %v780_v39  ;;  %v828_v48 = vsel %vm757_vm1, %v725_v34, %v796_v40  ;;  %v669_v49 = vmul.f32 %v1590_v24, %v537_v45  ;;  %v685_v50 = vmul.f32 %v1590_v24, %v601_v46 }
  0xf5   : > { %vm739_vm2 = vcmp.ge.f32.partialorder %v707_v41, 0.0  ;;  %v778_v51 = vmul.f32 %v1602_v30, %v707_v41  ;;  %vm755_vm3 = vcmp.ge.f32.partialorder %v723_v42, 0.0  ;;  %v794_v52 = vmul.f32 %v1602_v30, %v723_v42  ;;  %v1375_v53 = vpop.f32.mrf.mxu0  ;;  %v1391_v54 = vpop.f32.mrf.mxu1 }
  0xf6   : > { %v710_v55 = vadd.f32 %v1595_v26, %v671_v43  ;;  %v726_v56 = vadd.f32 %v1595_v26, %v687_v44  ;;  %v708_v57 = vadd.f32 %v1595_v26, %v669_v49  ;;  %v724_v58 = vadd.f32 %v1595_v26, %v685_v50 }
  0xf7   : > { %v810_v59 = vsel %vm739_vm2, %v707_v41, %v778_v51  ;;  %v826_v60 = vsel %vm755_vm3, %v723_v42, %v794_v52  ;;  %v674_v61 = vmul.f32 %v1375_v53, %v1590_v24  ;;  %v690_v62 = vmul.f32 %v1391_v54, %v1590_v24  ;;  %v550_v63 = vpop.f32.mrf.mxu0  ;;  %v614_v0 = vpop.f32.mrf.mxu1 }
  0xf8   : > { %vm742_vm4 = vcmp.ge.f32.partialorder %v710_v55, 0.0  ;;  %v781_v1 = vmul.f32 %v1602_v30, %v710_v55  ;;  %vm758_vm5 = vcmp.ge.f32.partialorder %v726_v56, 0.0  ;;  %v797_v2 = vmul.f32 %v1602_v30, %v726_v56 }
  0xf9   : > { %vm740_vm6 = vcmp.ge.f32.partialorder %v708_v57, 0.0  ;;  %v779_v3 = vmul.f32 %v1602_v30, %v708_v57  ;;  %vm756_vm7 = vcmp.ge.f32.partialorder %v724_v58, 0.0  ;;  %v795_v4 = vmul.f32 %v1602_v30, %v724_v58  ;;  %v1376_v5 = vpop.f32.mrf.mxu0  ;;  %v1392_v6 = vpop.f32.mrf.mxu1 }
  0xfa   : > { %v813_v7 = vsel %vm742_vm4, %v710_v55, %v781_v1  ;;  %v829_v8 = vsel %vm758_vm5, %v726_v56, %v797_v2  ;;  %v713_v9 = vadd.f32 %v1595_v26, %v674_v61  ;;  %v729_v10 = vadd.f32 %v1595_v26, %v690_v62 }
  0xfb   : > { %v1242_v11 = vpack.c.bf16 %v813_v7, %v812_v47  ;;  %v1282_v12 = vpack.c.bf16 %v829_v8, %v828_v48  ;;  %v811_v13 = vsel %vm740_vm6, %v708_v57, %v779_v3  ;;  %v827_v14 = vsel %vm756_vm7, %v724_v58, %v795_v4  ;;  %v553_v15 = vpop.f32.mrf.mxu0  ;;  %v617_v16 = vpop.f32.mrf.mxu1 }
  0xfc   : > { %v1237_v17 = vpack.c.bf16 %v811_v13, %v810_v59  ;;  %v1277_v18 = vpack.c.bf16 %v827_v14, %v826_v60  ;;  %vm745_vm8 = vcmp.ge.f32.partialorder %v713_v9, 0.0  ;;  %v784_v19 = vmul.f32 %v1602_v30, %v713_v9 }
  0xfd   : > { %1314 = vst [vmem:[%s1633_s6 + $0x8] sm:$0xff] %v1242_v11   ;;  %1322 = vst [vmem:[%s1633_s6 + $0x48] sm:$0xff] %v1282_v12   ;;  %vm761_vm9 = vcmp.ge.f32.partialorder %v729_v10, 0.0  ;;  %v800_v20 = vmul.f32 %v1602_v30, %v729_v10  ;;  %v672_v21 = vmul.f32 %v1590_v24, %v550_v63  ;;  %v688_v22 = vmul.f32 %v1590_v24, %v614_v0  ;;  %v1379_v23 = vpop.f32.mrf.mxu0  ;;  %v1395_v25 = vpop.f32.mrf.mxu1 }
  0xfe   : > { %1238 = vst [vmem:[%s1633_s6] sm:$0xff] %v1237_v17   ;;  %1321 = vst [vmem:[%s1633_s6 + $0x40] sm:$0xff] %v1277_v18   ;;  %v816_v27 = vsel %vm745_vm8, %v713_v9, %v784_v19  ;;  %v675_v28 = vmul.f32 %v1376_v5, %v1590_v24  ;;  %v691_v29 = vmul.f32 %v1392_v6, %v1590_v24 }
  0xff   : > { %v673_v31 = vmul.f32 %v1590_v24, %v553_v15  ;;  %v832_v32 = vsel %vm761_vm9, %v729_v10, %v800_v20  ;;  %v711_v33 = vadd.f32 %v1595_v26, %v672_v21  ;;  %v727_v34 = vadd.f32 %v1595_v26, %v688_v22  ;;  %v566_v36 = vpop.f32.mrf.mxu0  ;;  %v630_v37 = vpop.f32.mrf.mxu1 }
 0x100   : > { %v689_v35 = vmul.f32 %v1590_v24, %v617_v16  ;;  %v714_v38 = vadd.f32 %v1595_v26, %v675_v28  ;;  %v730_v39 = vadd.f32 %v1595_v26, %v691_v29  ;;  %v678_v41 = vmul.f32 %v1379_v23, %v1590_v24 }
 0x101   : > { %v712_v40 = vadd.f32 %v1595_v26, %v673_v31  ;;  %vm743_vm10 = vcmp.ge.f32.partialorder %v711_v33, 0.0  ;;  %v782_v42 = vmul.f32 %v1602_v30, %v711_v33  ;;  %vm759_vm11 = vcmp.ge.f32.partialorder %v727_v34, 0.0  ;;  %v1380_v44 = vpop.f32.mrf.mxu0  ;;  %v1396_v45 = vpop.f32.mrf.mxu1 }
 0x102   : > { %v798_v43 = vmul.f32 %v1602_v30, %v727_v34  ;;  %vm746_vm12 = vcmp.ge.f32.partialorder %v714_v38, 0.0  ;;  %v785_v46 = vmul.f32 %v1602_v30, %v714_v38  ;;  %vm762_vm13 = vcmp.ge.f32.partialorder %v730_v39, 0.0 }
 0x103   : > { %v801_v47 = vmul.f32 %v1602_v30, %v730_v39  ;;  %v814_v48 = vsel %vm743_vm10, %v711_v33, %v782_v42  ;;  %vm744_vm14 = vcmp.ge.f32.partialorder %v712_v40, 0.0  ;;  %v783_v50 = vmul.f32 %v1602_v30, %v712_v40  ;;  %v569_v51 = vpop.f32.mrf.mxu0  ;;  %v633_v52 = vpop.f32.mrf.mxu1 }
 0x104   : > { %v830_v49 = vsel %vm759_vm11, %v727_v34, %v798_v43  ;;  %v817_v53 = vsel %vm746_vm12, %v714_v38, %v785_v46  ;;  %v728_v55 = vadd.f32 %v1595_v26, %v689_v35  ;;  %v717_v56 = vadd.f32 %v1595_v26, %v678_v41 }
 0x105   : > { %v833_v54 = vsel %vm762_vm13, %v730_v39, %v801_v47  ;;  %v1252_v57 = vpack.c.bf16 %v817_v53, %v816_v27  ;;  %v815_v59 = vsel %vm744_vm14, %v712_v40, %v783_v50  ;;  %v694_v60 = vmul.f32 %v1395_v25, %v1590_v24  ;;  %v1383_v61 = vpop.f32.mrf.mxu0  ;;  %v1399_v4 = vpop.f32.mrf.mxu1 }
 0x106   : > { %v1292_v58 = vpack.c.bf16 %v833_v54, %v832_v32  ;;  %v1247_v62 = vpack.c.bf16 %v815_v59, %v814_v48  ;;  %vm760_vm15 = vcmp.ge.f32.partialorder %v728_v55, 0.0  ;;  %v799_v63 = vmul.f32 %v1602_v30, %v728_v55 }
 0x107   : > { %vm749_vm0 = vcmp.ge.f32.partialorder %v717_v56, 0.0  ;;  %1316 = vst [vmem:[%s1633_s6 + $0x18] sm:$0xff] %v1252_v57   ;;  %v788_v0 = vmul.f32 %v1602_v30, %v717_v56  ;;  %v733_v1 = vadd.f32 %v1595_v26, %v694_v60  ;;  %v676_v2 = vmul.f32 %v1590_v24, %v566_v36  ;;  %v582_v9 = vpop.f32.mrf.mxu0  ;;  %v646_v20 = vpop.f32.mrf.mxu1 }
 0x108   : > { %1324 = vst [vmem:[%s1633_s6 + $0x58] sm:$0xff] %v1292_v58   ;;  %v692_v3 = vmul.f32 %v1590_v24, %v630_v37  ;;  %1315 = vst [vmem:[%s1633_s6 + $0x10] sm:$0xff] %v1247_v62   ;;  %v831_v5 = vsel %vm760_vm15, %v728_v55, %v799_v63  ;;  %v679_v6 = vmul.f32 %v1380_v44, %v1590_v24 }
 0x109   : > { %v695_v7 = vmul.f32 %v1396_v45, %v1590_v24  ;;  %v677_v8 = vmul.f32 %v1590_v24, %v569_v51  ;;  %v1287_v10 = vpack.c.bf16 %v831_v5, %v830_v49  ;;  %vm765_vm1 = vcmp.ge.f32.partialorder %v733_v1, 0.0  ;;  %v1384_v25 = vpop.f32.mrf.mxu0  ;;  %v1400_v36 = vpop.f32.mrf.mxu1 }
 0x10a   : > { %v804_v11 = vmul.f32 %v1602_v30, %v733_v1  ;;  %v715_v12 = vadd.f32 %v1595_v26, %v676_v2  ;;  %v731_v13 = vadd.f32 %v1595_v26, %v692_v3  ;;  %v718_v14 = vadd.f32 %v1595_v26, %v679_v6 }
 0x10b   : > { %v734_v15 = vadd.f32 %v1595_v26, %v695_v7  ;;  %1323 = vst [vmem:[%s1633_s6 + $0x50] sm:$0xff] %v1287_v10   ;;  %v820_v16 = vsel %vm749_vm0, %v717_v56, %v788_v0  ;;  %v716_v17 = vadd.f32 %v1595_v26, %v677_v8  ;;  %v693_v18 = vmul.f32 %v1590_v24, %v633_v52  ;;  %v585_v41 = vpop.f32.mrf.mxu0  ;;  %v649_v53 = vpop.f32.mrf.mxu1 }
 0x10c   : > { %v682_v19 = vmul.f32 %v1383_v61, %v1590_v24  ;;  %v836_v21 = vsel %vm765_vm1, %v733_v1, %v804_v11  ;;  %vm747_vm2 = vcmp.ge.f32.partialorder %v715_v12, 0.0  ;;  %v786_v22 = vmul.f32 %v1602_v30, %v715_v12 }
 0x10d   : > { %v802_v23 = vmul.f32 %v1602_v30, %v731_v13  ;;  %vm750_vm3 = vcmp.ge.f32.partialorder %v718_v14, 0.0  ;;  %v789_v27 = vmul.f32 %v1602_v30, %v718_v14  ;;  %vm766_vm4 = vcmp.ge.f32.partialorder %v734_v15, 0.0 }
 0x10e   : > { %v805_v28 = vmul.f32 %v1602_v30, %v734_v15  ;;  %v818_v29 = vsel %vm747_vm2, %v715_v12, %v786_v22  ;;  %vm763_vm5 = vcmp.ge.f32.partialorder %v731_v13, 0.0  ;;  %vm748_vm6 = vcmp.ge.f32.partialorder %v716_v17, 0.0 }
 0x10f   : > { %v787_v31 = vmul.f32 %v1602_v30, %v716_v17  ;;  %v821_v32 = vsel %vm750_vm3, %v718_v14, %v789_v27  ;;  %v732_v34 = vadd.f32 %v1595_v26, %v693_v18  ;;  %v721_v35 = vadd.f32 %v1595_v26, %v682_v19 }
 0x110   : > { %v837_v33 = vsel %vm766_vm4, %v734_v15, %v805_v28  ;;  %v1262_v37 = vpack.c.bf16 %v821_v32, %v820_v16  ;;  %v698_v40 = vmul.f32 %v1399_v4, %v1590_v24  ;;  %v834_v42 = vsel %vm763_vm5, %v731_v13, %v802_v23 }
 0x111   : > { %v1302_v38 = vpack.c.bf16 %v837_v33, %v836_v21  ;;  %v819_v39 = vsel %vm748_vm6, %v716_v17, %v787_v31  ;;  %vm764_vm7 = vcmp.ge.f32.partialorder %v732_v34, 0.0  ;;  %v803_v44 = vmul.f32 %v1602_v30, %v732_v34 }
 0x112   : > { %v1257_v43 = vpack.c.bf16 %v819_v39, %v818_v29  ;;  %1318 = vst [vmem:[%s1633_s6 + $0x28] sm:$0xff] %v1262_v37   ;;  %v792_v45 = vmul.f32 %v1602_v30, %v721_v35  ;;  %v737_v46 = vadd.f32 %v1595_v26, %v698_v40  ;;  %v680_v47 = vmul.f32 %v1590_v24, %v582_v9 }
 0x113   : > { %1326 = vst [vmem:[%s1633_s6 + $0x68] sm:$0xff] %v1302_v38   ;;  %v696_v48 = vmul.f32 %v1590_v24, %v646_v20  ;;  %v835_v49 = vsel %vm764_vm7, %v732_v34, %v803_v44  ;;  %v683_v50 = vmul.f32 %v1384_v25, %v1590_v24  ;;  %v699_v51 = vmul.f32 %v1400_v36, %v1590_v24 }
 0x114   : > { %1317 = vst [vmem:[%s1633_s6 + $0x20] sm:$0xff] %v1257_v43   ;;  %v681_v52 = vmul.f32 %v1590_v24, %v585_v41  ;;  %v1297_v54 = vpack.c.bf16 %v835_v49, %v834_v42  ;;  %vm753_vm8 = vcmp.ge.f32.partialorder %v721_v35, 0.0  ;;  %v808_v55 = vmul.f32 %v1602_v30, %v737_v46 }
 0x115   : > { %v719_v56 = vadd.f32 %v1595_v26, %v680_v47  ;;  %v735_v57 = vadd.f32 %v1595_v26, %v696_v48  ;;  %v722_v58 = vadd.f32 %v1595_v26, %v683_v50  ;;  %v738_v59 = vadd.f32 %v1595_v26, %v699_v51 }
 0x116   : > { %1325 = vst [vmem:[%s1633_s6 + $0x60] sm:$0xff] %v1297_v54   ;;  %vm769_vm9 = vcmp.ge.f32.partialorder %v737_v46, 0.0  ;;  %v720_v60 = vadd.f32 %v1595_v26, %v681_v52  ;;  %v697_v61 = vmul.f32 %v1590_v24, %v649_v53  ;;  %v824_v62 = vsel %vm753_vm8, %v721_v35, %v792_v45 }
 0x117   : > { %vm751_vm10 = vcmp.ge.f32.partialorder %v719_v56, 0.0  ;;  %v790_v63 = vmul.f32 %v1602_v30, %v719_v56  ;;  %vm754_vm11 = vcmp.ge.f32.partialorder %v722_v58, 0.0  ;;  %v793_v0 = vmul.f32 %v1602_v30, %v722_v58 }
 0x118   : > { %vm770_vm12 = vcmp.ge.f32.partialorder %v738_v59, 0.0  ;;  %v809_v1 = vmul.f32 %v1602_v30, %v738_v59  ;;  %v840_v2 = vsel %vm769_vm9, %v737_v46, %v808_v55  ;;  %vm767_vm13 = vcmp.ge.f32.partialorder %v735_v57, 0.0 }
 0x119   : > { %vm752_vm14 = vcmp.ge.f32.partialorder %v720_v60, 0.0  ;;  %v791_v3 = vmul.f32 %v1602_v30, %v720_v60  ;;  %v806_v24 = vmul.f32 %v1602_v30, %v735_v57  ;;  %v825_v4 = vsel %vm754_vm11, %v722_v58, %v793_v0 }
 0x11a   : > { %v841_v5 = vsel %vm770_vm12, %v738_v59, %v809_v1  ;;  %v736_v6 = vadd.f32 %v1595_v26, %v697_v61  ;;  %v822_v7 = vsel %vm751_vm10, %v719_v56, %v790_v63  ;;  %v1272_v8 = vpack.c.bf16 %v825_v4, %v824_v62 }
 0x11b   : > { %v1312_v9 = vpack.c.bf16 %v841_v5, %v840_v2  ;;  %v823_v10 = vsel %vm752_vm14, %v720_v60, %v791_v3  ;;  %v838_v13 = vsel %vm767_vm13, %v735_v57, %v806_v24 }
 0x11c   : > { %v1267_v11 = vpack.c.bf16 %v823_v10, %v822_v7  ;;  %vm768_vm15 = vcmp.ge.f32.partialorder %v736_v6, 0.0  ;;  %v807_v12 = vmul.f32 %v1602_v30, %v736_v6  ;;  %1320 = vst [vmem:[%s1633_s6 + $0x38] sm:$0xff] %v1272_v8  }
 0x11d   : > { %1328 = vst [vmem:[%s1633_s6 + $0x78] sm:$0xff] %v1312_v9  }
 0x11e   : > { %1319 = vst [vmem:[%s1633_s6 + $0x30] sm:$0xff] %v1267_v11   ;;  %v839_v14 = vsel %vm768_vm15, %v736_v6, %v807_v12 }
 0x11f   : > { %v1307_v15 = vpack.c.bf16 %v839_v14, %v838_v13 }
 0x121   : > { %1327 = vst [vmem:[%s1633_s6 + $0x70] sm:$0xff] %v1307_v15  }
 0x122 PF: > { %s15_s20 = sadd.s32 1, %s1487_s20   ;;  %s1738_s18 = smov %s1483_s19 }
 0x123   : > { %p12_p5 = scmp.ge.s32.totalorder %s15_s20, 4   ;;  %s1739_s19 = smov %s1741_s21 }
 0x125   :  { %14 = sbr.rel (!%p12_p5) target bundleno = 2 (0x2), region = 82 }

// kernel: _lambda_.4
= control target key start
LH: loop header
LB: loop body
LE: loop exit
PB: predicated region body
PF: predicated region fallthrough
CT: control target
= control target key end

     0   :  { %s2228_s18 = smov 0   ;;  %s2230_s19 = smov 0   ;;  %s2559_s0 = inlined_call_operand.vmem [shape: bf16[512,384], index: 0, kind: input, shape index: {}]   ;;  %s2560_s1 = inlined_call_operand.vmem [shape: bf16[384,128], index: 1, kind: input, shape index: {}]   ;;  %s2561_s2 = inlined_call_operand.vmem [shape: f32[1,128], index: 2, kind: input, shape index: {}]   ;;  %s2562_s3 = inlined_call_operand.vmem [shape: f32[1,128], index: 3, kind: input, shape index: {}]   ;;  %s2563_s4 = inlined_call_operand.vmem [shape: f32[1,128], index: 4, kind: input, shape index: {}]   ;;  %s2564_s5 = inlined_call_operand.vmem [shape: bf16[512,128], index: 5, kind: output, shape index: {}]  }
   0x1   :  { %s2232_s20 = smov 0  }
   0x2 LB: > { %s27_s21 = sadd.s32 1, %s2192_s19  ;;  %p1620_p0 = scmp.ge.s32.totalorder %s2196_s20, 1  ;;  %s2196_s20 = sphi %s2232_s20, %s15_s20   ;;  %s2192_s19 = sphi %s2230_s19, %s2566_s19   ;;  %s2188_s18 = sphi %s2228_s18, %s2565_s18  }
   0x3   : > { %p29_p1 = scmp.ge.s32.totalorder %s27_s21, 2  ;;  %p236_p2 = scmp.lt.s32.totalorder %s2196_s20, 3 }
   0x5   : > { %s2568_s21 = smov (%p29_p1, %s27_s21), 0  ;;  %p237_p3 = pnand %p1620_p0, %p236_p2 }
   0x6   : > { %s1621_s24 = sshll.u32 (!%p237_p3), %s2188_s18, 5 }
   0x7   : > { %240 = sbr.rel (%p237_p3) target bundleno = 349 (0x15d), region = 40  ;;  %p282_p4 = scmp.lt.s32.totalorder (!%p237_p3), %s1621_s24, 63 }
   0xc   : > { %v2086_v0 = vld [vmem:[%s2560_s1 + $0x78] sm:$0xff]   ;;  %v2088_v2 = vld [vmem:[%s2560_s1 + $0x70] sm:$0xff]   ;;  %v2090_v4 = vld [vmem:[%s2560_s1 + $0x68] sm:$0xff]   ;;  %s2570_s24 = smov (!%p282_p4, %s1621_s24), 63 }
   0xd   : > { %v2087_v1 = vld [vmem:[%s2560_s1 + $0x38] sm:$0xff]   ;;  %1861 = vmatprep.subr.bf16.mxu0 %v2086_v0  ;;  %2045 = vmatprep.subr.bf16.mxu1 %v2086_v0  ;;  %v2089_v3 = vld [vmem:[%s2560_s1 + $0x30] sm:$0xff]   ;;  %v2091_v5 = vld [vmem:[%s2560_s1 + $0x28] sm:$0xff]   ;;  %s2061_s12 = smul.u32 12, %s2570_s24  ;;  %s1624_s14 = sshll.u32 %s2570_s24, 2 }
   0xe   : > { %1862 = vmatpush3.bf16.msra.mxu0 %v2087_v1  ;;  %2053 = vmatpush3.bf16.msra.mxu1 %v2087_v1  ;;  %v2092_v6 = vld [vmem:[%s2560_s1 + $0x60] sm:$0xff]   ;;  %v2094_v8 = vld [vmem:[%s2560_s1 + $0x58] sm:$0xff]   ;;  %v2096_v10 = vld [vmem:[%s2560_s1 + $0x50] sm:$0xff]   ;;  %s2428_s16 = scalar_lea.vmem %s2564_s5, %s1624_s14 }
   0xf   : > { %1863 = vmatprep.subr.bf16.mxu0 %v2088_v2  ;;  %2046 = vmatprep.subr.bf16.mxu1 %v2088_v2  ;;  %v2093_v7 = vld [vmem:[%s2560_s1 + $0x20] sm:$0xff]   ;;  %s2279_s22 = scalar_lea.vmem %s2559_s0, %s2061_s12  ;;  %v2095_v9 = vld [vmem:[%s2560_s1 + $0x18] sm:$0xff]   ;;  %v2097_v13 = vld [vmem:[%s2560_s1 + $0x10] sm:$0xff]  }
  0x10   : > { %v2104_v11 = vld [vmem:[%s2279_s22 + $0x4] ss:$12 sps:$4 sm:$0xff]   ;;  %v2098_v14 = vld [vmem:[%s2560_s1 + $0x48] sm:$0xff]   ;;  %v2108_v18 = vld [vmem:[%s2560_s1 + $0xb8] sm:$0xff]  }
  0x11   : > { %v2107_v12 = vld [vmem:[%s2279_s22 + $0x124] ss:$12 sps:$4 sm:$0xff]   ;;  %855 = vmatprep.mubr.bf16.mxu0 %v2104_v11  ;;  %v2099_v15 = vld [vmem:[%s2560_s1 + $0x8] sm:$0xff]   ;;  %v2118_v28 = vld [vmem:[%s2279_s22 + $0x34] ss:$12 sps:$4 sm:$0xff]  }
  0x12   : > { %1864 = vmatpush3.bf16.msra.mxu0 %v2089_v3  ;;  %2054 = vmatpush3.bf16.msra.mxu1 %v2089_v3  ;;  %v2100_v16 = vld [vmem:[%s2560_s1 + $0x40] sm:$0xff]   ;;  %v2110_v21 = vld [vmem:[%s2279_s22 + $0x1c] ss:$12 sps:$4 sm:$0xff]   ;;  %v2109_v22 = vld [vmem:[%s2560_s1 + $0xb0] sm:$0xff]  }
  0x13   : > { %1865 = vmatprep.subr.bf16.mxu0 %v2090_v4  ;;  %2047 = vmatprep.subr.bf16.mxu1 %v2090_v4  ;;  %v2101_v17 = vld [vmem:[%s2560_s1] sm:$0xff]   ;;  %v2112_v23 = vld [vmem:[%s2279_s22 + $0x13c] ss:$12 sps:$4 sm:$0xff]   ;;  %v2125_v33 = vld [vmem:[%s2560_s1 + $0x90] sm:$0xff]  }
  0x14   : > { %951 = vmatprep.mubr.bf16.mxu1 %v2107_v12  ;;  %v2102_v19 = vld [vmem:[%s2279_s22] ss:$12 sps:$4 sm:$0xff]   ;;  %v2114_v24 = vld [vmem:[%s2279_s22 + $0x18] ss:$12 sps:$4 sm:$0xff]   ;;  %v2122_v31 = vld [vmem:[%s2279_s22 + $0x30] ss:$12 sps:$4 sm:$0xff]  }
  0x15   : > { %v2105_v20 = vld [vmem:[%s2279_s22 + $0x120] ss:$12 sps:$4 sm:$0xff]   ;;  %v2115_v26 = vld [vmem:[%s2279_s22 + $0x138] ss:$12 sps:$4 sm:$0xff]   ;;  %v2123_v32 = vld [vmem:[%s2279_s22 + $0x150] ss:$12 sps:$4 sm:$0xff]  }
  0x16   : > { %1866 = vmatpush3.bf16.msra.mxu0 %v2091_v5  ;;  %2055 = vmatpush3.bf16.msra.mxu1 %v2091_v5  ;;  %v2116_v25 = vld [vmem:[%s2560_s1 + $0xa8] sm:$0xff]   ;;  %v2117_v27 = vld [vmem:[%s2560_s1 + $0xa0] sm:$0xff]   ;;  %v2124_v30 = vld [vmem:[%s2560_s1 + $0x98] sm:$0xff]  }
  0x17   : > { %1867 = vmatprep.subr.bf16.mxu0 %v2092_v6  ;;  %2048 = vmatprep.subr.bf16.mxu1 %v2092_v6  ;;  %v2120_v29 = vld [vmem:[%s2279_s22 + $0x154] ss:$12 sps:$4 sm:$0xff]   ;;  %v2126_v34 = vld [vmem:[%s2279_s22 + $0x4c] ss:$12 sps:$4 sm:$0xff]   ;;  %v2134_v39 = vld [vmem:[%s2279_s22 + $0x64] ss:$12 sps:$4 sm:$0xff]  }
  0x18   : > { %v2128_v35 = vld [vmem:[%s2279_s22 + $0x16c] ss:$12 sps:$4 sm:$0xff]   ;;  %v2130_v37 = vld [vmem:[%s2279_s22 + $0x48] ss:$12 sps:$4 sm:$0xff]   ;;  %v2133_v40 = vld [vmem:[%s2560_s1 + $0x80] sm:$0xff]  }
  0x19   : > { %v2132_v36 = vld [vmem:[%s2560_s1 + $0x88] sm:$0xff]   ;;  %v2141_v45 = vld [vmem:[%s2279_s22 + $0x38] ss:$12 sps:$4 sm:$0xff]   ;;  %v2143_v47 = vld [vmem:[%s2279_s22 + $0x50] ss:$12 sps:$4 sm:$0xff]  }
  0x1a   : > { %1868 = vmatpush3.bf16.msra.mxu0 %v2093_v7  ;;  %2056 = vmatpush3.bf16.msra.mxu1 %v2093_v7  ;;  %v2131_v38 = vld [vmem:[%s2279_s22 + $0x168] ss:$12 sps:$4 sm:$0xff]   ;;  %v2137_v42 = vld [vmem:[%s2279_s22 + $0x60] ss:$12 sps:$4 sm:$0xff]   ;;  %v2142_v46 = vld [vmem:[%s2279_s22 + $0x78] ss:$12 sps:$4 sm:$0xff]  }
  0x1b   : > { %1869 = vmatprep.subr.bf16.mxu0 %v2094_v8  ;;  %2049 = vmatprep.subr.bf16.mxu1 %v2094_v8  ;;  %v2136_v41 = vld [vmem:[%s2279_s22 + $0x8] ss:$12 sps:$4 sm:$0xff]   ;;  %v2138_v43 = vld [vmem:[%s2279_s22 + $0x20] ss:$12 sps:$4 sm:$0xff]   ;;  %v2147_v50 = vld [vmem:[%s2279_s22 + $0x90] ss:$12 sps:$4 sm:$0xff]  }
  0x1c   : > { %v2139_v44 = vld [vmem:[%s2279_s22 + $0x7c] ss:$12 sps:$4 sm:$0xff]   ;;  %v2144_v48 = vld [vmem:[%s2279_s22 + $0x94] ss:$12 sps:$4 sm:$0xff]   ;;  %v2149_v52 = vld [vmem:[%s2279_s22 + $0xac] ss:$12 sps:$4 sm:$0xff]  }
  0x1d   : > { %v2146_v49 = vld [vmem:[%s2279_s22 + $0x68] ss:$12 sps:$4 sm:$0xff]   ;;  %v2148_v51 = vld [vmem:[%s2279_s22 + $0x80] ss:$12 sps:$4 sm:$0xff]   ;;  %v2151_v53 = vld [vmem:[%s2279_s22 + $0x98] ss:$12 sps:$4 sm:$0xff]  }
  0x1e   : > { %1870 = vmatpush3.bf16.msra.mxu0 %v2095_v9  ;;  %2057 = vmatpush3.bf16.msra.mxu1 %v2095_v9  ;;  %v2152_v54 = vld [vmem:[%s2279_s22 + $0xa8] ss:$12 sps:$4 sm:$0xff]   ;;  %v2153_v55 = vld [vmem:[%s2279_s22 + $0xb0] ss:$12 sps:$4 sm:$0xff]   ;;  %v2157_v58 = vld [vmem:[%s2279_s22 + $0xc0] ss:$12 sps:$4 sm:$0xff]  }
  0x1f   : > { %1871 = vmatprep.subr.bf16.mxu0 %v2096_v10  ;;  %2050 = vmatprep.subr.bf16.mxu1 %v2096_v10  ;;  %v2154_v56 = vld [vmem:[%s2279_s22 + $0xc4] ss:$12 sps:$4 sm:$0xff]   ;;  %v2156_v57 = vld [vmem:[%s2279_s22 + $0xc8] ss:$12 sps:$4 sm:$0xff]   ;;  %v2158_v59 = vld [vmem:[%s2279_s22 + $0xe0] ss:$12 sps:$4 sm:$0xff]  }
  0x20   : > { %v2159_v60 = vld [vmem:[%s2279_s22 + $0xdc] ss:$12 sps:$4 sm:$0xff]   ;;  %v2161_v61 = vld [vmem:[%s2279_s22 + $0xf8] ss:$12 sps:$4 sm:$0xff]   ;;  %v2164_v0 = vld [vmem:[%s2279_s22 + $0xf4] ss:$12 sps:$4 sm:$0xff]  }
  0x21   : > { %v2162_v62 = vld [vmem:[%s2279_s22 + $0xd8] ss:$12 sps:$4 sm:$0xff]   ;;  %v2163_v63 = vld [vmem:[%s2279_s22 + $0x110] ss:$12 sps:$4 sm:$0xff]   ;;  %v2166_v1 = vld [vmem:[%s2279_s22 + $0x128] ss:$12 sps:$4 sm:$0xff]  }
  0x22   : > { %1872 = vmatpush3.bf16.msra.mxu0 %v2097_v13  ;;  %2058 = vmatpush3.bf16.msra.mxu1 %v2097_v13  ;;  %v2167_v2 = vld [vmem:[%s2279_s22 + $0xf0] ss:$12 sps:$4 sm:$0xff]   ;;  %v2168_v3 = vld [vmem:[%s2279_s22 + $0x140] ss:$12 sps:$4 sm:$0xff]   ;;  %v2171_v5 = vld [vmem:[%s2279_s22 + $0x158] ss:$12 sps:$4 sm:$0xff]  }
  0x23   : > { %1873 = vmatprep.subr.bf16.mxu0 %v2098_v14  ;;  %2051 = vmatprep.subr.bf16.mxu1 %v2098_v14  ;;  %v2169_v4 = vld [vmem:[%s2279_s22 + $0x10c] ss:$12 sps:$4 sm:$0xff]   ;;  %v2172_v6 = vld [vmem:[%s2279_s22 + $0x108] ss:$12 sps:$4 sm:$0xff]   ;;  %v2173_v7 = vld [vmem:[%s2279_s22 + $0x170] ss:$12 sps:$4 sm:$0xff]  }
  0x26   : > { %1874 = vmatpush3.bf16.msra.mxu0 %v2099_v15  ;;  %2059 = vmatpush3.bf16.msra.mxu1 %v2099_v15 }
  0x27   : > { %1875 = vmatprep.subr.bf16.mxu0 %v2100_v16  ;;  %2052 = vmatprep.subr.bf16.mxu1 %v2100_v16 }
  0x2a   : > { %1876 = vmatpush3.bf16.msra.mxu0 %v2101_v17  ;;  %2060 = vmatpush3.bf16.msra.mxu1 %v2101_v17 }
  0x2b   : > { %1997 = vmatprep.subr.bf16.mxu1 %v2108_v18 }
  0x2d   : > { %856 = vmatmul.mubr.bf16.vlgmr.msra.gmra.mxu0 %v2102_v19  ;;  %952 = vmatmul.mubr.bf16.vlgmr.msra.gmra.mxu1 %v2105_v20 }
  0x2e   : > { %1998 = vmatpush3.bf16.msra.mxu1 %v2108_v18  ;;  %863 = vmatprep.mubr.bf16.mxu0 %v2110_v21 }
  0x2f   : > { %1999 = vmatprep.subr.bf16.mxu1 %v2109_v22  ;;  %959 = vmatprep.mubr.bf16.mxu1 %v2112_v23 }
  0x32   : > { %2000 = vmatpush3.bf16.msra.mxu1 %v2109_v22 }
  0x33   : > { %2001 = vmatprep.subr.bf16.mxu1 %v2116_v25 }
  0x35   : > { %864 = vmatmul.mubr.bf16.gmra.mxu0 %v2114_v24  ;;  %960 = vmatmul.mubr.bf16.gmra.mxu1 %v2115_v26 }
  0x36   : > { %2002 = vmatpush3.bf16.msra.mxu1 %v2116_v25  ;;  %871 = vmatprep.mubr.bf16.mxu0 %v2118_v28 }
  0x37   : > { %2003 = vmatprep.subr.bf16.mxu1 %v2117_v27  ;;  %967 = vmatprep.mubr.bf16.mxu1 %v2120_v29 }
  0x3a   : > { %2004 = vmatpush3.bf16.msra.mxu1 %v2117_v27 }
  0x3b   : > { %2005 = vmatprep.subr.bf16.mxu1 %v2124_v30 }
  0x3d   : > { %872 = vmatmul.mubr.bf16.gmra.mxu0 %v2122_v31  ;;  %968 = vmatmul.mubr.bf16.gmra.mxu1 %v2123_v32 }
  0x3e   : > { %2006 = vmatpush3.bf16.msra.mxu1 %v2124_v30  ;;  %879 = vmatprep.mubr.bf16.mxu0 %v2126_v34 }
  0x3f   : > { %2007 = vmatprep.subr.bf16.mxu1 %v2125_v33  ;;  %975 = vmatprep.mubr.bf16.mxu1 %v2128_v35 }
  0x42   : > { %2008 = vmatpush3.bf16.msra.mxu1 %v2125_v33 }
  0x43   : > { %2009 = vmatprep.subr.bf16.mxu1 %v2132_v36 }
  0x45   : > { %880 = vmatmul.mubr.bf16.gmra.mxu0 %v2130_v37  ;;  %976 = vmatmul.mubr.bf16.gmra.mxu1 %v2131_v38 }
  0x46   : > { %2010 = vmatpush3.bf16.msra.mxu1 %v2132_v36  ;;  %887 = vmatprep.mubr.bf16.mxu0 %v2134_v39 }
  0x47   : > { %2011 = vmatprep.subr.bf16.mxu1 %v2133_v40  ;;  %2013 = vmatprep.mubr.bf16.mxu1 %v2136_v41 }
  0x4a   : > { %2012 = vmatpush3.bf16.msra.mxu1 %v2133_v40 }
  0x4d   : > { %888 = vmatmul.mubr.bf16.gmra.mxu0 %v2137_v42  ;;  %2014 = vmatmul.mubr.bf16.vlgmr.msra.gmra.mxu1 %v2138_v43 }
  0x4e   : > { %895 = vmatprep.mubr.bf16.mxu0 %v2139_v44  ;;  %2017 = vmatprep.mubr.bf16.mxu1 %v2141_v45 }
  0x55   : > { %896 = vmatmul.mubr.bf16.gmra.mxu0 %v2142_v46  ;;  %2018 = vmatmul.mubr.bf16.gmra.mxu1 %v2143_v47 }
  0x56   : > { %903 = vmatprep.mubr.bf16.mxu0 %v2144_v48  ;;  %2021 = vmatprep.mubr.bf16.mxu1 %v2146_v49 }
  0x5d   : > { %904 = vmatmul.mubr.bf16.gmra.mxu0 %v2147_v50  ;;  %2022 = vmatmul.mubr.bf16.gmra.mxu1 %v2148_v51  ;;  %v2395_v51 = vld [vmem:[%s2561_s2] ss:$0 sm:$0xff] }
  0x5e   : > { %911 = vmatprep.mubr.bf16.mxu0 %v2149_v52  ;;  %2025 = vmatprep.mubr.bf16.mxu1 %v2151_v53 }
  0x65   : > { %912 = vmatmul.mubr.bf16.gmra.mxu0 %v2152_v54  ;;  %2026 = vmatmul.mubr.bf16.gmra.mxu1 %v2153_v55  ;;  %v2400_v54 = vld [vmem:[%s2562_s3] ss:$0 sm:$0xff] }
  0x66   : > { %919 = vmatprep.mubr.bf16.mxu0 %v2154_v56  ;;  %2029 = vmatprep.mubr.bf16.mxu1 %v2156_v57 }
  0x6d   : > { %920 = vmatmul.mubr.bf16.gmra.mxu0 %v2157_v58  ;;  %2030 = vmatmul.mubr.bf16.gmra.mxu1 %v2158_v59 }
  0x6e   : > { %927 = vmatprep.mubr.bf16.mxu0 %v2159_v60  ;;  %2033 = vmatprep.mubr.bf16.mxu1 %v2161_v61 }
  0x75   : > { %928 = vmatmul.mubr.bf16.gmra.mxu0 %v2162_v62  ;;  %2034 = vmatmul.mubr.bf16.gmra.mxu1 %v2163_v63 }
  0x76   : > { %935 = vmatprep.mubr.bf16.mxu0 %v2164_v0  ;;  %2037 = vmatprep.mubr.bf16.mxu1 %v2166_v1 }
  0x7d   : > { %936 = vmatmul.mubr.bf16.gmra.mxu0 %v2167_v2  ;;  %2038 = vmatmul.mubr.bf16.gmra.mxu1 %v2168_v3  ;;  %v2412_v2 = vld [vmem:[%s2563_s4] ss:$0 sm:$0xff] }
  0x7e   : > { %943 = vmatprep.mubr.bf16.mxu0 %v2169_v4  ;;  %2041 = vmatprep.mubr.bf16.mxu1 %v2171_v5 }
  0x85   : > { %944 = vmatmul.mubr.bf16.gmra.mxu0 %v2172_v6  ;;  %2042 = vmatmul.mubr.bf16.gmra.mxu1 %v2173_v7 }
  0xed   : > { %v1877_v8 = vpop.f32.mrf.mxu0  ;;  %v1949_v9 = vpop.f32.mrf.mxu1 }
  0xef   : > { %v1878_v10 = vpop.f32.mrf.mxu0  ;;  %v1950_v11 = vpop.f32.mrf.mxu1 }
  0xf0   : > { %v2374_v12 = vadd.f32 %v1950_v11, %v1949_v9  ;;  %v1879_v52 = vadd.f32 %v1878_v10, %v1877_v8 }
  0xf1   : > { %v1880_v13 = vpop.f32.mrf.mxu0  ;;  %v1952_v14 = vpop.f32.mrf.mxu1 }
  0xf3   : > { %v1881_v15 = vpop.f32.mrf.mxu0  ;;  %v1953_v16 = vpop.f32.mrf.mxu1 }
  0xf4   : > { %v2376_v17 = vadd.f32 %v1953_v16, %v1952_v14  ;;  %v1882_v1 = vadd.f32 %v1881_v15, %v1880_v13 }
  0xf5   : > { %v1883_v18 = vpop.f32.mrf.mxu0  ;;  %v1955_v19 = vpop.f32.mrf.mxu1 }
  0xf7   : > { %v1884_v20 = vpop.f32.mrf.mxu0  ;;  %v1956_v21 = vpop.f32.mrf.mxu1 }
  0xf8   : > { %v2378_v22 = vadd.f32 %v1956_v21, %v1955_v19  ;;  %v1885_v47 = vadd.f32 %v1884_v20, %v1883_v18 }
  0xf9   : > { %v1886_v23 = vpop.f32.mrf.mxu0  ;;  %v1958_v24 = vpop.f32.mrf.mxu1 }
  0xfb   : > { %v1887_v25 = vpop.f32.mrf.mxu0  ;;  %v1959_v26 = vpop.f32.mrf.mxu1 }
  0xfc   : > { %v2380_v27 = vadd.f32 %v1959_v26, %v1958_v24  ;;  %v1888_v57 = vadd.f32 %v1887_v25, %v1886_v23 }
  0xfd   : > { %v1889_v28 = vpop.f32.mrf.mxu0  ;;  %v1961_v29 = vpop.f32.mrf.mxu1 }
  0xff   : > { %v1890_v30 = vpop.f32.mrf.mxu0  ;;  %v1962_v31 = vpop.f32.mrf.mxu1 }
 0x100   : > { %v2382_v32 = vadd.f32 %v1962_v31, %v1961_v29  ;;  %v1891_v13 = vadd.f32 %v1890_v30, %v1889_v28 }
 0x101   : > { %v1892_v33 = vpop.f32.mrf.mxu0  ;;  %v1964_v34 = vpop.f32.mrf.mxu1 }
 0x103   : > { %v1893_v35 = vpop.f32.mrf.mxu0  ;;  %v1965_v36 = vpop.f32.mrf.mxu1 }
 0x104   : > { %v2384_v37 = vadd.f32 %v1965_v36, %v1964_v34  ;;  %v1894_v20 = vadd.f32 %v1893_v35, %v1892_v33 }
 0x105   : > { %v1895_v38 = vpop.f32.mrf.mxu0  ;;  %v1967_v39 = vpop.f32.mrf.mxu1 }
 0x107   : > { %v1896_v40 = vpop.f32.mrf.mxu0  ;;  %v1968_v41 = vpop.f32.mrf.mxu1 }
 0x108   : > { %v2386_v42 = vadd.f32 %v1968_v41, %v1967_v39  ;;  %v1897_v6 = vadd.f32 %v1896_v40, %v1895_v38 }
 0x109   : > { %v1898_v43 = vpop.f32.mrf.mxu0  ;;  %v1970_v44 = vpop.f32.mrf.mxu1 }
 0x10b   : > { %v1899_v45 = vpop.f32.mrf.mxu0  ;;  %v1971_v46 = vpop.f32.mrf.mxu1 }
 0x10c   : > { %v2388_v48 = vadd.f32 %v1971_v46, %v1970_v44  ;;  %v1900_v21 = vadd.f32 %v1899_v45, %v1898_v43 }
 0x10d   : > { %v2390_v49 = vpop.f32.mrf.mxu0  ;;  %v2015_v50 = vpop.f32.mrf.mxu1 }
 0x10e   : > { %v1027_v53 = vadd.f32 %v2015_v50, %v1885_v47 }
 0x10f   : > { %v2402_v55 = vpop.f32.mrf.mxu0  ;;  %v1018_v56 = vpop.f32.mrf.mxu1 }
 0x110   : > { %v1154_v58 = vmul.f32 %v2395_v51, %v1027_v53  ;;  %v1019_v59 = vadd.f32 %v1879_v52, %v1018_v56 }
 0x111   : > { %v2405_v60 = vpop.f32.mrf.mxu0  ;;  %v2016_v61 = vpop.f32.mrf.mxu1 }
 0x112   : > { %v1193_v62 = vadd.f32 %v2400_v54, %v1154_v58  ;;  %v1152_v63 = vmul.f32 %v2395_v51, %v1019_v59  ;;  %v1030_v0 = vadd.f32 %v2016_v61, %v1888_v57  ;;  %v1903_v61 = vadd.f32 %v2402_v55, %v2390_v49 }
 0x113   : > { %v1905_v3 = vpop.f32.mrf.mxu0  ;;  %v1021_v4 = vpop.f32.mrf.mxu1 }
 0x114   : > { %v1155_v5 = vmul.f32 %v2395_v51, %v1030_v0  ;;  %v1191_v7 = vadd.f32 %v2400_v54, %v1152_v63  ;;  %v1022_v8 = vadd.f32 %v1882_v1, %v1021_v4  ;;  %v1264_v11 = vmul.f32 %v2412_v2, %v1193_v62 }
 0x115   : > { %v1907_v9 = vpop.f32.mrf.mxu0  ;;  %v2019_v10 = vpop.f32.mrf.mxu1  ;;  %vm1225_vm0 = vcmp.ge.f32.partialorder %v1193_v62, 0.0  ;;  %v1906_v1 = vadd.f32 %v1905_v3, %v2405_v60 }
 0x116   : > { %v1194_v14 = vadd.f32 %v2400_v54, %v1155_v5  ;;  %v1153_v15 = vmul.f32 %v2395_v51, %v1022_v8  ;;  %v1043_v16 = vadd.f32 %v2019_v10, %v1897_v6  ;;  %v1262_v24 = vmul.f32 %v2412_v2, %v1191_v7 }
 0x117   : > { %v1908_v18 = vpop.f32.mrf.mxu0  ;;  %v1034_v19 = vpop.f32.mrf.mxu1  ;;  %v1296_v31 = vsel %vm1225_vm0, %v1193_v62, %v1264_v11  ;;  %vm1223_vm2 = vcmp.ge.f32.partialorder %v1191_v7, 0.0 }
 0x118   : > { %vm1226_vm1 = vcmp.ge.f32.partialorder %v1194_v14, 0.0  ;;  %v1265_v23 = vmul.f32 %v2412_v2, %v1194_v14  ;;  %v1192_v25 = vadd.f32 %v2400_v54, %v1153_v15  ;;  %v1158_v26 = vmul.f32 %v2395_v51, %v1043_v16 }
 0x119   : > { %v1035_v29 = vadd.f32 %v1891_v13, %v1034_v19  ;;  %v1910_v28 = vpop.f32.mrf.mxu0  ;;  %v2020_v30 = vpop.f32.mrf.mxu1  ;;  %v1294_v45 = vsel %vm1223_vm2, %v1191_v7, %v1262_v24  ;;  %v1909_v50 = vadd.f32 %v1908_v18, %v1907_v9 }
 0x11a   : > { %v1297_v33 = vsel %vm1226_vm1, %v1194_v14, %v1265_v23  ;;  %v1046_v34 = vadd.f32 %v2020_v30, %v1900_v21  ;;  %vm1224_vm3 = vcmp.ge.f32.partialorder %v1192_v25, 0.0  ;;  %v1263_v36 = vmul.f32 %v2412_v2, %v1192_v25 }
 0x11b   : > { %v1774_v35 = vpack.c.bf16 %v1297_v33, %v1296_v31  ;;  %v1197_v38 = vadd.f32 %v2400_v54, %v1158_v26  ;;  %v1911_v39 = vpop.f32.mrf.mxu0  ;;  %v1037_v40 = vpop.f32.mrf.mxu1  ;;  %v1156_v41 = vmul.f32 %v2395_v51, %v1035_v29 }
 0x11c   : > { %v1159_v43 = vmul.f32 %v2395_v51, %v1046_v34  ;;  %v1038_v44 = vadd.f32 %v1894_v20, %v1037_v40  ;;  %v1295_v46 = vsel %vm1224_vm3, %v1192_v25, %v1263_v36  ;;  %v1912_v5 = vadd.f32 %v1911_v39, %v1910_v28 }
 0x11d   : > { %1846 = vst [vmem:[%s2428_s16 + $0x8] sm:$0xff] %v1774_v35   ;;  %v1268_v47 = vmul.f32 %v2412_v2, %v1197_v38  ;;  %v1913_v52 = vpop.f32.mrf.mxu0  ;;  %v2023_v53 = vpop.f32.mrf.mxu1  ;;  %v1769_v56 = vpack.c.bf16 %v1295_v46, %v1294_v45  ;;  %v1195_v57 = vadd.f32 %v2400_v54, %v1156_v41  ;;  %vm1229_vm4 = vcmp.ge.f32.partialorder %v1197_v38, 0.0 }
 0x11e   : > { %v1198_v58 = vadd.f32 %v2400_v54, %v1159_v43  ;;  %v1157_v59 = vmul.f32 %v2395_v51, %v1038_v44  ;;  %v1059_v62 = vadd.f32 %v2023_v53, %v1909_v50 }
 0x11f   : > { %v1914_v63 = vpop.f32.mrf.mxu0  ;;  %v1050_v0 = vpop.f32.mrf.mxu1  ;;  %1770 = vst [vmem:[%s2428_s16] sm:$0xff] %v1769_v56   ;;  %v1266_v6 = vmul.f32 %v2412_v2, %v1195_v57  ;;  %v1300_v55 = vsel %vm1229_vm4, %v1197_v38, %v1268_v47  ;;  %vm1227_vm6 = vcmp.ge.f32.partialorder %v1195_v57, 0.0 }
 0x120   : > { %vm1230_vm5 = vcmp.ge.f32.partialorder %v1198_v58, 0.0  ;;  %v1269_v4 = vmul.f32 %v2412_v2, %v1198_v58  ;;  %v1196_v7 = vadd.f32 %v2400_v54, %v1157_v59  ;;  %v1162_v8 = vmul.f32 %v2395_v51, %v1059_v62 }
 0x121   : > { %v1051_v9 = vadd.f32 %v1903_v61, %v1050_v0  ;;  %v1916_v10 = vpop.f32.mrf.mxu0  ;;  %v2024_v49 = vpop.f32.mrf.mxu1  ;;  %v1298_v21 = vsel %vm1227_vm6, %v1195_v57, %v1266_v6  ;;  %v1915_v33 = vadd.f32 %v1914_v63, %v1913_v52 }
 0x122   : > { %v1301_v11 = vsel %vm1230_vm5, %v1198_v58, %v1269_v4  ;;  %v1062_v14 = vadd.f32 %v2024_v49, %v1912_v5  ;;  %vm1228_vm7 = vcmp.ge.f32.partialorder %v1196_v7, 0.0  ;;  %v1267_v3 = vmul.f32 %v2412_v2, %v1196_v7 }
 0x123   : > { %v1784_v60 = vpack.c.bf16 %v1301_v11, %v1300_v55  ;;  %v1201_v13 = vadd.f32 %v2400_v54, %v1162_v8  ;;  %v1917_v15 = vpop.f32.mrf.mxu0  ;;  %v1053_v16 = vpop.f32.mrf.mxu1  ;;  %v1160_v18 = vmul.f32 %v2395_v51, %v1051_v9 }
 0x124   : > { %v1163_v19 = vmul.f32 %v2395_v51, %v1062_v14  ;;  %v1054_v20 = vadd.f32 %v1906_v1, %v1053_v16  ;;  %v1299_v23 = vsel %vm1228_vm7, %v1196_v7, %v1267_v3  ;;  %v1918_v47 = vadd.f32 %v1917_v15, %v1916_v10 }
 0x125   : > { %1848 = vst [vmem:[%s2428_s16 + $0x18] sm:$0xff] %v1784_v60   ;;  %v1272_v24 = vmul.f32 %v2412_v2, %v1201_v13  ;;  %v1919_v25 = vpop.f32.mrf.mxu0  ;;  %v2027_v26 = vpop.f32.mrf.mxu1  ;;  %v1779_v29 = vpack.c.bf16 %v1299_v23, %v1298_v21  ;;  %v1199_v28 = vadd.f32 %v2400_v54, %v1160_v18  ;;  %vm1233_vm8 = vcmp.ge.f32.partialorder %v1201_v13, 0.0 }
 0x126   : > { %v1202_v30 = vadd.f32 %v2400_v54, %v1163_v19  ;;  %v1161_v31 = vmul.f32 %v2395_v51, %v1054_v20 }
 0x127   : > { %v1920_v34 = vpop.f32.mrf.mxu0  ;;  %v1066_v35 = vpop.f32.mrf.mxu1  ;;  %1847 = vst [vmem:[%s2428_s16 + $0x10] sm:$0xff] %v1779_v29   ;;  %v1270_v38 = vmul.f32 %v2412_v2, %v1199_v28  ;;  %v1304_v45 = vsel %vm1233_vm8, %v1201_v13, %v1272_v24  ;;  %vm1231_vm10 = vcmp.ge.f32.partialorder %v1199_v28, 0.0 }
 0x128   : > { %vm1234_vm9 = vcmp.ge.f32.partialorder %v1202_v30, 0.0  ;;  %v1273_v36 = vmul.f32 %v2412_v2, %v1202_v30  ;;  %v1200_v39 = vadd.f32 %v2400_v54, %v1161_v31  ;;  %v1921_v40 = vadd.f32 %v1920_v34, %v1919_v25 }
 0x129   : > { %v1067_v41 = vadd.f32 %v1915_v33, %v1066_v35  ;;  %v1922_v43 = vpop.f32.mrf.mxu0  ;;  %v2028_v44 = vpop.f32.mrf.mxu1  ;;  %v1302_v62 = vsel %vm1231_vm10, %v1199_v28, %v1270_v38 }
 0x12a   : > { %v1305_v46 = vsel %vm1234_vm9, %v1202_v30, %v1273_v36  ;;  %vm1232_vm11 = vcmp.ge.f32.partialorder %v1200_v39, 0.0  ;;  %v1271_v52 = vmul.f32 %v2412_v2, %v1200_v39  ;;  %v1075_v53 = vadd.f32 %v2027_v26, %v1921_v40 }
 0x12b   : > { %v1794_v50 = vpack.c.bf16 %v1305_v46, %v1304_v45  ;;  %v1923_v56 = vpop.f32.mrf.mxu0  ;;  %v1069_v57 = vpop.f32.mrf.mxu1  ;;  %v1164_v58 = vmul.f32 %v2395_v51, %v1067_v41 }
 0x12c   : > { %v1924_v59 = vadd.f32 %v1923_v56, %v1922_v43  ;;  %v1070_v61 = vadd.f32 %v1918_v47, %v1069_v57  ;;  %v1303_v63 = vsel %vm1232_vm11, %v1200_v39, %v1271_v52  ;;  %v1166_v0 = vmul.f32 %v2395_v51, %v1075_v53 }
 0x12d   : > { %1850 = vst [vmem:[%s2428_s16 + $0x28] sm:$0xff] %v1794_v50   ;;  %v1925_v1 = vpop.f32.mrf.mxu0  ;;  %v2031_v4 = vpop.f32.mrf.mxu1  ;;  %v1789_v5 = vpack.c.bf16 %v1303_v63, %v1302_v62  ;;  %v1203_v6 = vadd.f32 %v2400_v54, %v1164_v58 }
 0x12e   : > { %v1078_v7 = vadd.f32 %v2028_v44, %v1924_v59  ;;  %v1165_v8 = vmul.f32 %v2395_v51, %v1070_v61  ;;  %v1205_v9 = vadd.f32 %v2400_v54, %v1166_v0 }
 0x12f   : > { %v1926_v10 = vpop.f32.mrf.mxu0  ;;  %v1082_v49 = vpop.f32.mrf.mxu1  ;;  %1849 = vst [vmem:[%s2428_s16 + $0x20] sm:$0xff] %v1789_v5   ;;  %vm1235_vm12 = vcmp.ge.f32.partialorder %v1203_v6, 0.0  ;;  %v1274_v55 = vmul.f32 %v2412_v2, %v1203_v6 }
 0x130   : > { %v1167_v11 = vmul.f32 %v2395_v51, %v1078_v7  ;;  %v1204_v14 = vadd.f32 %v2400_v54, %v1165_v8  ;;  %v1927_v60 = vadd.f32 %v1926_v10, %v1925_v1  ;;  %v1276_v15 = vmul.f32 %v2412_v2, %v1205_v9 }
 0x131   : > { %v1928_v3 = vpop.f32.mrf.mxu0  ;;  %v2032_v13 = vpop.f32.mrf.mxu1  ;;  %vm1237_vm14 = vcmp.ge.f32.partialorder %v1205_v9, 0.0  ;;  %v1306_v19 = vsel %vm1235_vm12, %v1203_v6, %v1274_v55 }
 0x132   : > { %v1206_v16 = vadd.f32 %v2400_v54, %v1167_v11  ;;  %vm1236_vm13 = vcmp.ge.f32.partialorder %v1204_v14, 0.0  ;;  %v1275_v18 = vmul.f32 %v2412_v2, %v1204_v14  ;;  %v1083_v20 = vadd.f32 %v1927_v60, %v1082_v49 }
 0x133   : > { %v1929_v21 = vpop.f32.mrf.mxu0  ;;  %v1085_v23 = vpop.f32.mrf.mxu1  ;;  %v1308_v33 = vsel %vm1237_vm14, %v1205_v9, %v1276_v15 }
 0x134   : > { %vm1238_vm15 = vcmp.ge.f32.partialorder %v1206_v16, 0.0  ;;  %v1277_v24 = vmul.f32 %v2412_v2, %v1206_v16  ;;  %v1307_v25 = vsel %vm1236_vm13, %v1204_v14, %v1275_v18  ;;  %v1930_v26 = vadd.f32 %v1929_v21, %v1928_v3 }
 0x135   : > { %v1799_v29 = vpack.c.bf16 %v1307_v25, %v1306_v19  ;;  %v1168_v28 = vmul.f32 %v2395_v51, %v1083_v20  ;;  %v1931_v30 = vpop.f32.mrf.mxu0  ;;  %v2476_v31 = vpop.f32.mrf.mxu1 }
 0x136   : > { %v1309_v34 = vsel %vm1238_vm15, %v1206_v16, %v1277_v24  ;;  %v1086_v35 = vadd.f32 %v1930_v26, %v1085_v23 }
 0x137   : > { %v1804_v36 = vpack.c.bf16 %v1309_v34, %v1308_v33  ;;  %1851 = vst [vmem:[%s2428_s16 + $0x30] sm:$0xff] %v1799_v29   ;;  %v1207_v38 = vadd.f32 %v2400_v54, %v1168_v28  ;;  %v1932_v39 = vpop.f32.mrf.mxu0  ;;  %v1098_v40 = vpop.f32.mrf.mxu1 }
 0x138   : > { %v1169_v41 = vmul.f32 %v2395_v51, %v1086_v35  ;;  %v1933_v43 = vadd.f32 %v1932_v39, %v1931_v30 }
 0x139   : > { %1852 = vst [vmem:[%s2428_s16 + $0x38] sm:$0xff] %v1804_v36   ;;  %v1278_v44 = vmul.f32 %v2412_v2, %v1207_v38  ;;  %v1934_v45 = vpop.f32.mrf.mxu0  ;;  %v2483_v46 = vpop.f32.mrf.mxu1  ;;  %vm1239_vm0 = vcmp.ge.f32.partialorder %v1207_v38, 0.0 }
 0x13a   : > { %v1208_v47 = vadd.f32 %v2400_v54, %v1169_v41  ;;  %v1091_v50 = vadd.f32 %v2031_v4, %v1933_v43 }
 0x13b   : > { %v1935_v52 = vpop.f32.mrf.mxu0  ;;  %v1101_v53 = vpop.f32.mrf.mxu1  ;;  %v1310_v59 = vsel %vm1239_vm0, %v1207_v38, %v1278_v44 }
 0x13c   : > { %vm1240_vm1 = vcmp.ge.f32.partialorder %v1208_v47, 0.0  ;;  %v1279_v56 = vmul.f32 %v2412_v2, %v1208_v47  ;;  %v1170_v57 = vmul.f32 %v2395_v51, %v1091_v50  ;;  %v1936_v58 = vadd.f32 %v1935_v52, %v1934_v45 }
 0x13d   : > { %v1937_v61 = vpop.f32.mrf.mxu0  ;;  %v2039_v62 = vpop.f32.mrf.mxu1 }
 0x13e   : > { %v1311_v63 = vsel %vm1240_vm1, %v1208_v47, %v1279_v56  ;;  %v1209_v0 = vadd.f32 %v2400_v54, %v1170_v57  ;;  %v1094_v1 = vadd.f32 %v2032_v13, %v1936_v58  ;;  %v1123_v5 = vadd.f32 %v2039_v62, %v2378_v22 }
 0x13f   : > { %v1809_v6 = vpack.c.bf16 %v1311_v63, %v1310_v59  ;;  %v1938_v4 = vpop.f32.mrf.mxu0  ;;  %v1114_v7 = vpop.f32.mrf.mxu1 }
 0x140   : > { %v1171_v8 = vmul.f32 %v2395_v51, %v1094_v1  ;;  %v1178_v9 = vmul.f32 %v2395_v51, %v1123_v5  ;;  %v1939_v10 = vadd.f32 %v1938_v4, %v1937_v61  ;;  %v1115_v49 = vadd.f32 %v2374_v12, %v1114_v7 }
 0x141   : > { %1853 = vst [vmem:[%s2428_s16 + $0x40] sm:$0xff] %v1809_v6   ;;  %v1940_v55 = vpop.f32.mrf.mxu0  ;;  %v2040_v11 = vpop.f32.mrf.mxu1  ;;  %v1280_v14 = vmul.f32 %v2412_v2, %v1209_v0  ;;  %vm1241_vm2 = vcmp.ge.f32.partialorder %v1209_v0, 0.0 }
 0x142   : > { %v1210_v60 = vadd.f32 %v2400_v54, %v1171_v8  ;;  %v1217_v3 = vadd.f32 %v2400_v54, %v1178_v9  ;;  %v1126_v22 = vadd.f32 %v2040_v11, %v2380_v27  ;;  %v1099_v13 = vadd.f32 %v1939_v10, %v1098_v40 }
 0x143   : > { %v1176_v15 = vmul.f32 %v2395_v51, %v1115_v49  ;;  %v1941_v16 = vpop.f32.mrf.mxu0  ;;  %v1117_v18 = vpop.f32.mrf.mxu1  ;;  %v1312_v27 = vsel %vm1241_vm2, %v1209_v0, %v1280_v14 }
 0x144   : > { %vm1242_vm3 = vcmp.ge.f32.partialorder %v1210_v60, 0.0  ;;  %v1281_v19 = vmul.f32 %v2412_v2, %v1210_v60  ;;  %v1172_v12 = vmul.f32 %v2395_v51, %v1099_v13  ;;  %v1179_v21 = vmul.f32 %v2395_v51, %v1126_v22 }
 0x145   : > { %v1215_v20 = vadd.f32 %v2400_v54, %v1176_v15  ;;  %v1942_v23 = vadd.f32 %v1941_v16, %v1940_v55  ;;  %v1943_v24 = vpop.f32.mrf.mxu0  ;;  %v2043_v25 = vpop.f32.mrf.mxu1  ;;  %vm1249_vm4 = vcmp.ge.f32.partialorder %v1217_v3, 0.0  ;;  %v1118_v29 = vadd.f32 %v2376_v17, %v1117_v18 }
 0x146   : > { %v1313_v26 = vsel %vm1242_vm3, %v1210_v60, %v1281_v19  ;;  %v1288_v30 = vmul.f32 %v2412_v2, %v1217_v3  ;;  %v1211_v33 = vadd.f32 %v2400_v54, %v1172_v12  ;;  %v1139_v34 = vadd.f32 %v2043_v25, %v2386_v42 }
 0x147   : > { %v1814_v28 = vpack.c.bf16 %v1313_v26, %v1312_v27  ;;  %v1944_v35 = vpop.f32.mrf.mxu0  ;;  %v1130_v36 = vpop.f32.mrf.mxu1  ;;  %vm1247_vm5 = vcmp.ge.f32.partialorder %v1215_v20, 0.0  ;;  %v1218_v38 = vadd.f32 %v2400_v54, %v1179_v21  ;;  %v1102_v39 = vadd.f32 %v1942_v23, %v1101_v53 }
 0x148   : > { %v1177_v40 = vmul.f32 %v2395_v51, %v1118_v29  ;;  %vm1243_vm6 = vcmp.ge.f32.partialorder %v1211_v33, 0.0  ;;  %v1282_v41 = vmul.f32 %v2412_v2, %v1211_v33  ;;  %v1286_v17 = vmul.f32 %v2412_v2, %v1215_v20 }
 0x149   : > { %1854 = vst [vmem:[%s2428_s16 + $0x48] sm:$0xff] %v1814_v28   ;;  %v1945_v43 = vadd.f32 %v1944_v35, %v1943_v24  ;;  %v1946_v44 = vpop.f32.mrf.mxu0  ;;  %v2044_v45 = vpop.f32.mrf.mxu1  ;;  %vm1250_vm7 = vcmp.ge.f32.partialorder %v1218_v38, 0.0  ;;  %v1289_v42 = vmul.f32 %v2412_v2, %v1218_v38  ;;  %v1173_v47 = vmul.f32 %v2395_v51, %v1102_v39 }
 0x14a   : > { %v1216_v50 = vadd.f32 %v2400_v54, %v1177_v40  ;;  %v1320_v52 = vsel %vm1249_vm4, %v1217_v3, %v1288_v30  ;;  %v1182_v53 = vmul.f32 %v2395_v51, %v1139_v34  ;;  %v1131_v57 = vadd.f32 %v2382_v32, %v1130_v36 }
 0x14b   : > { %v1107_v56 = vadd.f32 %v2476_v31, %v1945_v43  ;;  %v1321_v58 = vsel %vm1250_vm7, %v1218_v38, %v1289_v42  ;;  %v1212_v59 = vadd.f32 %v2400_v54, %v1173_v47  ;;  %v1314_v62 = vsel %vm1243_vm6, %v1211_v33, %v1282_v41  ;;  %v1947_v5 = vpop.f32.mrf.mxu0  ;;  %v1133_v6 = vpop.f32.mrf.mxu1 }
 0x14c   : > { %vm1248_vm8 = vcmp.ge.f32.partialorder %v1216_v50, 0.0  ;;  %v1287_v61 = vmul.f32 %v2412_v2, %v1216_v50  ;;  %v1318_v63 = vsel %vm1247_vm5, %v1215_v20, %v1286_v17  ;;  %v1834_v0 = vpack.c.bf16 %v1321_v58, %v1320_v52 }
 0x14d   : > { %v1174_v1 = vmul.f32 %v2395_v51, %v1107_v56  ;;  %vm1244_vm9 = vcmp.ge.f32.partialorder %v1212_v59, 0.0  ;;  %v1283_v31 = vmul.f32 %v2412_v2, %v1212_v59  ;;  %v1180_v4 = vmul.f32 %v2395_v51, %v1131_v57 }
 0x14e   : > { %v1319_v32 = vsel %vm1248_vm8, %v1216_v50, %v1287_v61  ;;  %1858 = vst [vmem:[%s2428_s16 + $0x68] sm:$0xff] %v1834_v0   ;;  %v1221_v8 = vadd.f32 %v2400_v54, %v1182_v53  ;;  %v1142_v10 = vadd.f32 %v2044_v45, %v2388_v48  ;;  %v1948_v11 = vadd.f32 %v1947_v5, %v1946_v44 }
 0x14f   : > { %v1829_v7 = vpack.c.bf16 %v1319_v32, %v1318_v63  ;;  %v1213_v9 = vadd.f32 %v2400_v54, %v1174_v1  ;;  %v1315_v49 = vsel %vm1244_vm9, %v1212_v59, %v1283_v31  ;;  %v1219_v55 = vadd.f32 %v2400_v54, %v1180_v4 }
 0x150   : > { %v1134_v14 = vadd.f32 %v2384_v37, %v1133_v6  ;;  %v1819_v60 = vpack.c.bf16 %v1315_v49, %v1314_v62  ;;  %v1183_v22 = vmul.f32 %v2395_v51, %v1142_v10  ;;  %v1110_v13 = vadd.f32 %v2483_v46, %v1948_v11 }
 0x151   : > { %1857 = vst [vmem:[%s2428_s16 + $0x60] sm:$0xff] %v1829_v7   ;;  %vm1245_vm10 = vcmp.ge.f32.partialorder %v1213_v9, 0.0  ;;  %v1284_v3 = vmul.f32 %v2412_v2, %v1213_v9  ;;  %v1292_v48 = vmul.f32 %v2412_v2, %v1221_v8  ;;  %v1290_v18 = vmul.f32 %v2412_v2, %v1219_v55 }
 0x152   : > { %v1181_v15 = vmul.f32 %v2395_v51, %v1134_v14  ;;  %1855 = vst [vmem:[%s2428_s16 + $0x50] sm:$0xff] %v1819_v60   ;;  %v1222_v19 = vadd.f32 %v2400_v54, %v1183_v22  ;;  %vm1253_vm11 = vcmp.ge.f32.partialorder %v1221_v8, 0.0  ;;  %vm1251_vm12 = vcmp.ge.f32.partialorder %v1219_v55, 0.0 }
 0x153   : > { %v1316_v16 = vsel %vm1245_vm10, %v1213_v9, %v1284_v3  ;;  %v1175_v37 = vmul.f32 %v2395_v51, %v1110_v13  ;;  %v1324_v23 = vsel %vm1253_vm11, %v1221_v8, %v1292_v48  ;;  %v1322_v24 = vsel %vm1251_vm12, %v1219_v55, %v1290_v18 }
 0x154   : > { %v1220_v12 = vadd.f32 %v2400_v54, %v1181_v15  ;;  %vm1254_vm13 = vcmp.ge.f32.partialorder %v1222_v19, 0.0  ;;  %v1293_v46 = vmul.f32 %v2412_v2, %v1222_v19 }
 0x155   : > { %v1214_v20 = vadd.f32 %v2400_v54, %v1175_v37 }
 0x156   : > { %vm1252_vm14 = vcmp.ge.f32.partialorder %v1220_v12, 0.0  ;;  %v1291_v21 = vmul.f32 %v2412_v2, %v1220_v12  ;;  %v1325_v25 = vsel %vm1254_vm13, %v1222_v19, %v1293_v46 }
 0x157   : > { %v1844_v27 = vpack.c.bf16 %v1325_v25, %v1324_v23  ;;  %vm1246_vm15 = vcmp.ge.f32.partialorder %v1214_v20, 0.0  ;;  %v1285_v26 = vmul.f32 %v2412_v2, %v1214_v20 }
 0x158   : > { %v1323_v51 = vsel %vm1252_vm14, %v1220_v12, %v1291_v21 }
 0x159   : > { %v1839_v29 = vpack.c.bf16 %v1323_v51, %v1322_v24  ;;  %1860 = vst [vmem:[%s2428_s16 + $0x78] sm:$0xff] %v1844_v27   ;;  %v1317_v28 = vsel %vm1246_vm15, %v1214_v20, %v1285_v26 }
 0x15a   : > { %v1824_v30 = vpack.c.bf16 %v1317_v28, %v1316_v16 }
 0x15b   : > { %1859 = vst [vmem:[%s2428_s16 + $0x70] sm:$0xff] %v1839_v29  }
 0x15c   : > { %1856 = vst [vmem:[%s2428_s16 + $0x58] sm:$0xff] %v1824_v30  }
 0x15d PF: > { %s15_s20 = sadd.s32 1, %s2196_s20   ;;  %s2565_s18 = smov %s2192_s19 }
 0x15e   : > { %p12_p5 = scmp.ge.s32.totalorder %s15_s20, 4   ;;  %s2566_s19 = smov %s2568_s21 }
 0x160   :  { %14 = sbr.rel (!%p12_p5) target bundleno = 2 (0x2), region = 82 }

// kernel: _lambda_.5
= control target key start
LH: loop header
LB: loop body
LE: loop exit
PB: predicated region body
PF: predicated region fallthrough
CT: control target
= control target key end

     0   :  { %10 = vsyncpa [#allocation3], 0  ;;  %s2571_s0 = inlined_call_operand.vmem [shape: bf16[512,384], index: 0, kind: input, shape index: {}]   ;;  %s2572_s1 = inlined_call_operand.vmem [shape: bf16[384,128], index: 1, kind: input, shape index: {}]   ;;  %s2573_s2 = inlined_call_operand.vmem [shape: f32[1,128], index: 2, kind: input, shape index: {}]   ;;  %s2574_s3 = inlined_call_operand.vmem [shape: f32[1,128], index: 3, kind: input, shape index: {}]   ;;  %s2575_s4 = inlined_call_operand.vmem [shape: bf16[512,128], index: 4, kind: input, shape index: {}]   ;;  %s2576_s5 = inlined_call_operand.hbm [shape: f32[512,128], index: 5, kind: output, shape index: {}]  }
   0x1   :  { %12 = vsyncpa [#allocation3 + $0x1], 0  ;;  %s2132_s18 = smov 0   ;;  %s2134_s19 = smov 0  }
   0x2   :  { %s2136_s20 = smov 0   ;;  %s2138_s21 = smov 0  }
   0x3   :  { %s2140_s22 = smov 0   ;;  %s2142_s23 = smov 0  }
   0x4 LB: > { %s1503_s24 = sadd.s32 4294967295, %s2097_s23   ;;  %s1504_s25 = sadd.s32 4294967294, %s2097_s23   ;;  %s2097_s23 = sphi %s2142_s23, %s18_s23   ;;  %s2093_s22 = sphi %s2140_s22, %s2583_s22   ;;  %s2089_s21 = sphi %s2138_s21, %s2582_s21   ;;  %s2085_s20 = sphi %s2136_s20, %s2581_s20   ;;  %s2081_s19 = sphi %s2134_s19, %s2580_s19   ;;  %s2077_s18 = sphi %s2132_s18, %s2579_s18  }
   0x5   : > { %s30_s26 = sadd.s32 1, %s2093_s22  ;;  %s171_s27 = sadd.s32 1, %s2085_s20 }
   0x6   : > { %p32_p0 = scmp.ge.s32.totalorder %s30_s26, 2  ;;  %p181_p1 = scmp.ne.s32.totalorder %s2085_s20, %s2081_s19 }
   0x7   : > { %p182_p2 = scmp.eq.s32.totalorder %s1503_s24, 1  ;;  %p187_p3 = scmp.ne.s32.totalorder %s2081_s19, %s2077_s18 }
   0x8   : > { %s2585_s26 = smov (%p32_p0, %s30_s26), 0  ;;  %p188_p5 = scmp.eq.s32.totalorder %s1504_s25, 1 }
   0x9   : > { %p2172_p4 = por %p182_p2, %p181_p1  ;;  %s166_s29 = ssub.s32 %s2093_s22, %s2585_s26 }
   0xa   : > { %p1510_p6 = scmp.ge.s32.totalorder %s2097_s23, 1  ;;  %p169_p7 = scmp.eq.s32.totalorder %s166_s29, 0 }
   0xb   : > { %p2179_p8 = por %p188_p5, %p187_p3  ;;  %p247_p9 = scmp.lt.s32.totalorder %s2097_s23, 3 }
   0xc   : > { %s2185_s6 = scalar_select %p169_p7, %s2085_s20, %s171_s27  }
   0xd   : > { %p248_p10 = pnand %p1510_p6, %p247_p9 }
   0xe   : > { %s1512_s9 = sshll.u32 (!%p248_p10), %s2089_s21, 5  ;;  %s291_s8 = sand.u32 (!%p248_p10), 1, %s2081_s19  }
   0xf   : > { %251 = sbr.rel (%p248_p10) target bundleno = 364 (0x16c), region = 40  ;;  %p295_p11 = scmp.lt.s32.totalorder (!%p248_p10), %s1512_s9, 63 }
  0x10   : > { %s1511_s13 = sshll.u32 (!%p248_p10), %s291_s8, 8  ;;  %s1595_s16 = sshll.u32 (!%p248_p10), %s2089_s21, 12 }
  0x11   : > { %s2375_s14 = scalar_lea.vmem (!%p248_p10), [#allocation2], %s1511_s13  ;;  %s2526_s21 = scalar_lea.sflag (!%p248_p10), [#allocation3], %s291_s8 }
  0x12   : > { %s1377_s17 = sshll.u32 (!%p248_p10), %s2375_s14, 4  ;;  %s2099_s29 = smov (!%p248_p10), [#allocation2]   ;;  %s2520_s17 = int_to_ptr.vmem [resolvable:$true] %s1377_s17 }
  0x13   : > { %s2021_s27 = scalar_lea.vmem (!%p248_p10), %s2520_s17, 4096 }
  0x14   : > { %v1933_v0 = vld [vmem:[%s2572_s1 + $0x78] sm:$0xff]   ;;  %v1935_v2 = vld [vmem:[%s2572_s1 + $0x70] sm:$0xff]   ;;  %v1937_v4 = vld [vmem:[%s2572_s1 + $0x68] sm:$0xff]   ;;  %s2587_s9 = smov (!%p295_p11, %s1512_s9), 63  ;;  %p2022_p12 = scmp.ne.s32.totalorder %s2520_s17, %s2021_s27 }
  0x15   : > { %v1934_v1 = vld [vmem:[%s2572_s1 + $0x38] sm:$0xff]   ;;  %1675 = vmatprep.subr.bf16.mxu0 %v1933_v0  ;;  %1859 = vmatprep.subr.bf16.mxu1 %v1933_v0  ;;  %v1936_v3 = vld [vmem:[%s2572_s1 + $0x30] sm:$0xff]   ;;  %v1938_v5 = vld [vmem:[%s2572_s1 + $0x28] sm:$0xff]   ;;  %s1875_s7 = smul.u32 12, %s2587_s9 }
  0x16   : > { %1676 = vmatpush3.bf16.msra.mxu0 %v1934_v1  ;;  %1867 = vmatpush3.bf16.msra.mxu1 %v1934_v1  ;;  %v1939_v6 = vld [vmem:[%s2572_s1 + $0x60] sm:$0xff]   ;;  %v1941_v8 = vld [vmem:[%s2572_s1 + $0x58] sm:$0xff]   ;;  %v1943_v10 = vld [vmem:[%s2572_s1 + $0x50] sm:$0xff]   ;;  %p2023_p13 = pnand %p2022_p12, %p2172_p4 }
  0x17   : > { %1677 = vmatprep.subr.bf16.mxu0 %v1935_v2  ;;  %1860 = vmatprep.subr.bf16.mxu1 %v1935_v2  ;;  %v1940_v7 = vld [vmem:[%s2572_s1 + $0x20] sm:$0xff]   ;;  %s2221_s15 = scalar_lea.vmem %s2571_s0, %s1875_s7  ;;  %v1942_v9 = vld [vmem:[%s2572_s1 + $0x18] sm:$0xff]   ;;  %v1944_v13 = vld [vmem:[%s2572_s1 + $0x10] sm:$0xff]  }
  0x18   : > { %v1951_v11 = vld [vmem:[%s2221_s15 + $0x4] ss:$12 sps:$4 sm:$0xff]   ;;  %v1945_v14 = vld [vmem:[%s2572_s1 + $0x48] sm:$0xff]   ;;  %v1955_v18 = vld [vmem:[%s2572_s1 + $0xb8] sm:$0xff]   ;;  %p2024_p0 = pneg %p2023_p13 }
  0x19   : > { %v1954_v12 = vld [vmem:[%s2221_s15 + $0x124] ss:$12 sps:$4 sm:$0xff]   ;;  %866 = vmatprep.mubr.bf16.mxu0 %v1951_v11  ;;  %v1946_v15 = vld [vmem:[%s2572_s1 + $0x8] sm:$0xff]   ;;  %v1965_v28 = vld [vmem:[%s2221_s15 + $0x34] ss:$12 sps:$4 sm:$0xff]  }
  0x1a   : > { %1678 = vmatpush3.bf16.msra.mxu0 %v1936_v3  ;;  %1868 = vmatpush3.bf16.msra.mxu1 %v1936_v3  ;;  %v1947_v16 = vld [vmem:[%s2572_s1 + $0x40] sm:$0xff]   ;;  %v1957_v21 = vld [vmem:[%s2221_s15 + $0x1c] ss:$12 sps:$4 sm:$0xff]   ;;  %v1956_v22 = vld [vmem:[%s2572_s1 + $0xb0] sm:$0xff]  }
  0x1b   : > { %1679 = vmatprep.subr.bf16.mxu0 %v1937_v4  ;;  %1861 = vmatprep.subr.bf16.mxu1 %v1937_v4  ;;  %v1948_v17 = vld [vmem:[%s2572_s1] sm:$0xff]   ;;  %v1959_v23 = vld [vmem:[%s2221_s15 + $0x13c] ss:$12 sps:$4 sm:$0xff]   ;;  %v1972_v33 = vld [vmem:[%s2572_s1 + $0x90] sm:$0xff]  }
  0x1c   : > { %962 = vmatprep.mubr.bf16.mxu1 %v1954_v12  ;;  %v1949_v19 = vld [vmem:[%s2221_s15] ss:$12 sps:$4 sm:$0xff]   ;;  %v1961_v24 = vld [vmem:[%s2221_s15 + $0x18] ss:$12 sps:$4 sm:$0xff]   ;;  %v1969_v31 = vld [vmem:[%s2221_s15 + $0x30] ss:$12 sps:$4 sm:$0xff]  }
  0x1d   : > { %v1952_v20 = vld [vmem:[%s2221_s15 + $0x120] ss:$12 sps:$4 sm:$0xff]   ;;  %v1962_v26 = vld [vmem:[%s2221_s15 + $0x138] ss:$12 sps:$4 sm:$0xff]   ;;  %v1970_v32 = vld [vmem:[%s2221_s15 + $0x150] ss:$12 sps:$4 sm:$0xff]  }
  0x1e   : > { %1680 = vmatpush3.bf16.msra.mxu0 %v1938_v5  ;;  %1869 = vmatpush3.bf16.msra.mxu1 %v1938_v5  ;;  %v1963_v25 = vld [vmem:[%s2572_s1 + $0xa8] sm:$0xff]   ;;  %v1964_v27 = vld [vmem:[%s2572_s1 + $0xa0] sm:$0xff]   ;;  %v1971_v30 = vld [vmem:[%s2572_s1 + $0x98] sm:$0xff]  }
  0x1f   : > { %1681 = vmatprep.subr.bf16.mxu0 %v1939_v6  ;;  %1862 = vmatprep.subr.bf16.mxu1 %v1939_v6  ;;  %v1967_v29 = vld [vmem:[%s2221_s15 + $0x154] ss:$12 sps:$4 sm:$0xff]   ;;  %v1973_v34 = vld [vmem:[%s2221_s15 + $0x4c] ss:$12 sps:$4 sm:$0xff]   ;;  %v1981_v39 = vld [vmem:[%s2221_s15 + $0x64] ss:$12 sps:$4 sm:$0xff]  }
  0x20   : > { %v1975_v35 = vld [vmem:[%s2221_s15 + $0x16c] ss:$12 sps:$4 sm:$0xff]   ;;  %v1977_v37 = vld [vmem:[%s2221_s15 + $0x48] ss:$12 sps:$4 sm:$0xff]   ;;  %v1980_v40 = vld [vmem:[%s2572_s1 + $0x80] sm:$0xff]  }
  0x21   : > { %v1979_v36 = vld [vmem:[%s2572_s1 + $0x88] sm:$0xff]   ;;  %v1988_v45 = vld [vmem:[%s2221_s15 + $0x38] ss:$12 sps:$4 sm:$0xff]   ;;  %v1990_v47 = vld [vmem:[%s2221_s15 + $0x50] ss:$12 sps:$4 sm:$0xff]  }
  0x22   : > { %1682 = vmatpush3.bf16.msra.mxu0 %v1940_v7  ;;  %1870 = vmatpush3.bf16.msra.mxu1 %v1940_v7  ;;  %v1978_v38 = vld [vmem:[%s2221_s15 + $0x168] ss:$12 sps:$4 sm:$0xff]   ;;  %v1984_v42 = vld [vmem:[%s2221_s15 + $0x60] ss:$12 sps:$4 sm:$0xff]   ;;  %v1989_v46 = vld [vmem:[%s2221_s15 + $0x78] ss:$12 sps:$4 sm:$0xff]  }
  0x23   : > { %1683 = vmatprep.subr.bf16.mxu0 %v1941_v8  ;;  %1863 = vmatprep.subr.bf16.mxu1 %v1941_v8  ;;  %v1983_v41 = vld [vmem:[%s2221_s15 + $0x8] ss:$12 sps:$4 sm:$0xff]   ;;  %v1985_v43 = vld [vmem:[%s2221_s15 + $0x20] ss:$12 sps:$4 sm:$0xff]   ;;  %v1994_v50 = vld [vmem:[%s2221_s15 + $0x90] ss:$12 sps:$4 sm:$0xff]  }
  0x24   : > { %v1986_v44 = vld [vmem:[%s2221_s15 + $0x7c] ss:$12 sps:$4 sm:$0xff]   ;;  %v1991_v48 = vld [vmem:[%s2221_s15 + $0x94] ss:$12 sps:$4 sm:$0xff]   ;;  %v1996_v52 = vld [vmem:[%s2221_s15 + $0xac] ss:$12 sps:$4 sm:$0xff]  }
  0x25   : > { %v1993_v49 = vld [vmem:[%s2221_s15 + $0x68] ss:$12 sps:$4 sm:$0xff]   ;;  %v1995_v51 = vld [vmem:[%s2221_s15 + $0x80] ss:$12 sps:$4 sm:$0xff]   ;;  %v1998_v53 = vld [vmem:[%s2221_s15 + $0x98] ss:$12 sps:$4 sm:$0xff]  }
  0x26   : > { %1684 = vmatpush3.bf16.msra.mxu0 %v1942_v9  ;;  %1871 = vmatpush3.bf16.msra.mxu1 %v1942_v9  ;;  %v1999_v54 = vld [vmem:[%s2221_s15 + $0xa8] ss:$12 sps:$4 sm:$0xff]   ;;  %v2000_v55 = vld [vmem:[%s2221_s15 + $0xb0] ss:$12 sps:$4 sm:$0xff]   ;;  %v2004_v58 = vld [vmem:[%s2221_s15 + $0xc0] ss:$12 sps:$4 sm:$0xff]  }
  0x27   : > { %1685 = vmatprep.subr.bf16.mxu0 %v1943_v10  ;;  %1864 = vmatprep.subr.bf16.mxu1 %v1943_v10  ;;  %v2001_v56 = vld [vmem:[%s2221_s15 + $0xc4] ss:$12 sps:$4 sm:$0xff]   ;;  %v2003_v57 = vld [vmem:[%s2221_s15 + $0xc8] ss:$12 sps:$4 sm:$0xff]   ;;  %v2005_v59 = vld [vmem:[%s2221_s15 + $0xe0] ss:$12 sps:$4 sm:$0xff]  }
  0x28   : > { %v2006_v60 = vld [vmem:[%s2221_s15 + $0xdc] ss:$12 sps:$4 sm:$0xff]   ;;  %v2008_v61 = vld [vmem:[%s2221_s15 + $0xf8] ss:$12 sps:$4 sm:$0xff]   ;;  %v2011_v0 = vld [vmem:[%s2221_s15 + $0xf4] ss:$12 sps:$4 sm:$0xff]  }
  0x29   : > { %v2009_v62 = vld [vmem:[%s2221_s15 + $0xd8] ss:$12 sps:$4 sm:$0xff]   ;;  %v2010_v63 = vld [vmem:[%s2221_s15 + $0x110] ss:$12 sps:$4 sm:$0xff]   ;;  %v2013_v1 = vld [vmem:[%s2221_s15 + $0x128] ss:$12 sps:$4 sm:$0xff]  }
  0x2a   : > { %1686 = vmatpush3.bf16.msra.mxu0 %v1944_v13  ;;  %1872 = vmatpush3.bf16.msra.mxu1 %v1944_v13  ;;  %v2014_v2 = vld [vmem:[%s2221_s15 + $0xf0] ss:$12 sps:$4 sm:$0xff]   ;;  %v2015_v3 = vld [vmem:[%s2221_s15 + $0x140] ss:$12 sps:$4 sm:$0xff]   ;;  %v2018_v5 = vld [vmem:[%s2221_s15 + $0x158] ss:$12 sps:$4 sm:$0xff]  }
  0x2b   : > { %1687 = vmatprep.subr.bf16.mxu0 %v1945_v14  ;;  %1865 = vmatprep.subr.bf16.mxu1 %v1945_v14  ;;  %v2016_v4 = vld [vmem:[%s2221_s15 + $0x10c] ss:$12 sps:$4 sm:$0xff]   ;;  %v2019_v6 = vld [vmem:[%s2221_s15 + $0x108] ss:$12 sps:$4 sm:$0xff]   ;;  %v2020_v7 = vld [vmem:[%s2221_s15 + $0x170] ss:$12 sps:$4 sm:$0xff]  }
  0x2c   : > { %s1515_s15 = sshll.u32 %s2587_s9, 2 }
  0x2d   : > { %s2342_s7 = scalar_lea.vmem %s2575_s4, %s1515_s15  ;;  %s2518_s15 = scalar_lea.hbm %s2576_s5, %s1595_s16 }
  0x2e   : > { %1688 = vmatpush3.bf16.msra.mxu0 %v1946_v15  ;;  %1873 = vmatpush3.bf16.msra.mxu1 %v1946_v15 }
  0x2f   : > { %1689 = vmatprep.subr.bf16.mxu0 %v1947_v16  ;;  %1866 = vmatprep.subr.bf16.mxu1 %v1947_v16 }
  0x32   : > { %1690 = vmatpush3.bf16.msra.mxu0 %v1948_v17  ;;  %1874 = vmatpush3.bf16.msra.mxu1 %v1948_v17 }
  0x33   : > { %1811 = vmatprep.subr.bf16.mxu1 %v1955_v18 }
  0x35   : > { %867 = vmatmul.mubr.bf16.vlgmr.msra.gmra.mxu0 %v1949_v19  ;;  %963 = vmatmul.mubr.bf16.vlgmr.msra.gmra.mxu1 %v1952_v20 }
  0x36   : > { %1812 = vmatpush3.bf16.msra.mxu1 %v1955_v18  ;;  %874 = vmatprep.mubr.bf16.mxu0 %v1957_v21 }
  0x37   : > { %1813 = vmatprep.subr.bf16.mxu1 %v1956_v22  ;;  %970 = vmatprep.mubr.bf16.mxu1 %v1959_v23 }
  0x3a   : > { %1814 = vmatpush3.bf16.msra.mxu1 %v1956_v22 }
  0x3b   : > { %1815 = vmatprep.subr.bf16.mxu1 %v1963_v25 }
  0x3d   : > { %875 = vmatmul.mubr.bf16.gmra.mxu0 %v1961_v24  ;;  %971 = vmatmul.mubr.bf16.gmra.mxu1 %v1962_v26 }
  0x3e   : > { %1816 = vmatpush3.bf16.msra.mxu1 %v1963_v25  ;;  %882 = vmatprep.mubr.bf16.mxu0 %v1965_v28 }
  0x3f   : > { %1817 = vmatprep.subr.bf16.mxu1 %v1964_v27  ;;  %978 = vmatprep.mubr.bf16.mxu1 %v1967_v29 }
  0x42   : > { %1818 = vmatpush3.bf16.msra.mxu1 %v1964_v27 }
  0x43   : > { %1819 = vmatprep.subr.bf16.mxu1 %v1971_v30 }
  0x45   : > { %883 = vmatmul.mubr.bf16.gmra.mxu0 %v1969_v31  ;;  %979 = vmatmul.mubr.bf16.gmra.mxu1 %v1970_v32 }
  0x46   : > { %1820 = vmatpush3.bf16.msra.mxu1 %v1971_v30  ;;  %890 = vmatprep.mubr.bf16.mxu0 %v1973_v34 }
  0x47   : > { %1821 = vmatprep.subr.bf16.mxu1 %v1972_v33  ;;  %986 = vmatprep.mubr.bf16.mxu1 %v1975_v35 }
  0x4a   : > { %1822 = vmatpush3.bf16.msra.mxu1 %v1972_v33 }
  0x4b   : > { %1823 = vmatprep.subr.bf16.mxu1 %v1979_v36 }
  0x4d   : > { %891 = vmatmul.mubr.bf16.gmra.mxu0 %v1977_v37  ;;  %987 = vmatmul.mubr.bf16.gmra.mxu1 %v1978_v38 }
  0x4e   : > { %1824 = vmatpush3.bf16.msra.mxu1 %v1979_v36  ;;  %898 = vmatprep.mubr.bf16.mxu0 %v1981_v39 }
  0x4f   : > { %1825 = vmatprep.subr.bf16.mxu1 %v1980_v40  ;;  %1827 = vmatprep.mubr.bf16.mxu1 %v1983_v41 }
  0x52   : > { %1826 = vmatpush3.bf16.msra.mxu1 %v1980_v40 }
  0x55   : > { %899 = vmatmul.mubr.bf16.gmra.mxu0 %v1984_v42  ;;  %1828 = vmatmul.mubr.bf16.vlgmr.msra.gmra.mxu1 %v1985_v43 }
  0x56   : > { %906 = vmatprep.mubr.bf16.mxu0 %v1986_v44  ;;  %1831 = vmatprep.mubr.bf16.mxu1 %v1988_v45 }
  0x5d   : > { %907 = vmatmul.mubr.bf16.gmra.mxu0 %v1989_v46  ;;  %1832 = vmatmul.mubr.bf16.gmra.mxu1 %v1990_v47 }
  0x5e   : > { %914 = vmatprep.mubr.bf16.mxu0 %v1991_v48  ;;  %1835 = vmatprep.mubr.bf16.mxu1 %v1993_v49  ;;  %v2352_v49 = vld [vmem:[%s2573_s2] ss:$0 sm:$0xff] }
  0x65   : > { %915 = vmatmul.mubr.bf16.gmra.mxu0 %v1994_v50  ;;  %1836 = vmatmul.mubr.bf16.gmra.mxu1 %v1995_v51  ;;  %v1660_v50 = vld [vmem:[%s2342_s7 + $0x8] sm:$0xff]  }
  0x66   : > { %922 = vmatprep.mubr.bf16.mxu0 %v1996_v52  ;;  %1839 = vmatprep.mubr.bf16.mxu1 %v1998_v53  ;;  %v2358_v53 = vld [vmem:[%s2574_s3] ss:$0 sm:$0xff] }
  0x6d   : > { %923 = vmatmul.mubr.bf16.gmra.mxu0 %v1999_v54  ;;  %1840 = vmatmul.mubr.bf16.gmra.mxu1 %v2000_v55 }
  0x6e   : > { %930 = vmatprep.mubr.bf16.mxu0 %v2001_v56  ;;  %1843 = vmatprep.mubr.bf16.mxu1 %v2003_v57  ;;  %v1597_v56 = vld [vmem:[%s2342_s7] sm:$0xff]  }
  0x75   : > { %931 = vmatmul.mubr.bf16.gmra.mxu0 %v2004_v58  ;;  %1844 = vmatmul.mubr.bf16.gmra.mxu1 %v2005_v59  ;;  %v1602_v59 = vunpack.c.l.bf16 %v1660_v50 }
  0x76   : > { %938 = vmatprep.mubr.bf16.mxu0 %v2006_v60  ;;  %1847 = vmatprep.mubr.bf16.mxu1 %v2008_v61 }
  0x7d   : > { %939 = vmatmul.mubr.bf16.gmra.mxu0 %v2009_v62  ;;  %1848 = vmatmul.mubr.bf16.gmra.mxu1 %v2010_v63 }
  0x7e   : > { %946 = vmatprep.mubr.bf16.mxu0 %v2011_v0  ;;  %1851 = vmatprep.mubr.bf16.mxu1 %v2013_v1  ;;  %v1598_v1 = vunpack.c.l.bf16 %v1597_v56 }
  0x85   : > { %947 = vmatmul.mubr.bf16.gmra.mxu0 %v2014_v2  ;;  %1852 = vmatmul.mubr.bf16.gmra.mxu1 %v2015_v3 }
  0x86   : > { %954 = vmatprep.mubr.bf16.mxu0 %v2016_v4  ;;  %1855 = vmatprep.mubr.bf16.mxu1 %v2018_v5  ;;  %v1603_v4 = vunpack.c.h.bf16 %v1660_v50 }
  0x8d   : > { %955 = vmatmul.mubr.bf16.gmra.mxu0 %v2019_v6  ;;  %1856 = vmatmul.mubr.bf16.gmra.mxu1 %v2020_v7 }
  0xf5   : > { %v1691_v8 = vpop.f32.mrf.mxu0  ;;  %v1763_v9 = vpop.f32.mrf.mxu1 }
  0xf7   : > { %v1692_v10 = vpop.f32.mrf.mxu0  ;;  %v1764_v11 = vpop.f32.mrf.mxu1 }
  0xf8   : > { %v2316_v12 = vadd.f32 %v1764_v11, %v1763_v9  ;;  %v1693_v51 = vadd.f32 %v1692_v10, %v1691_v8  ;;  %v1662_v11 = vld [vmem:[%s2342_s7 + $0x18] sm:$0xff]  }
  0xf9   : > { %v1694_v13 = vpop.f32.mrf.mxu0  ;;  %v1766_v14 = vpop.f32.mrf.mxu1 }
  0xfb   : > { %v1695_v15 = vpop.f32.mrf.mxu0  ;;  %v1767_v16 = vpop.f32.mrf.mxu1 }
  0xfc   : > { %v2318_v17 = vadd.f32 %v1767_v16, %v1766_v14  ;;  %v1696_v3 = vadd.f32 %v1695_v15, %v1694_v13 }
  0xfd   : > { %v1697_v18 = vpop.f32.mrf.mxu0  ;;  %v1769_v19 = vpop.f32.mrf.mxu1 }
  0xff   : > { %v1698_v20 = vpop.f32.mrf.mxu0  ;;  %v1770_v21 = vpop.f32.mrf.mxu1 }
 0x100   : > { %v2320_v22 = vadd.f32 %v1770_v21, %v1769_v19  ;;  %v1699_v46 = vadd.f32 %v1698_v20, %v1697_v18 }
 0x101   : > { %v1700_v23 = vpop.f32.mrf.mxu0  ;;  %v1772_v24 = vpop.f32.mrf.mxu1 }
 0x103   : > { %v1701_v25 = vpop.f32.mrf.mxu0  ;;  %v1773_v26 = vpop.f32.mrf.mxu1 }
 0x104   : > { %v2322_v27 = vadd.f32 %v1773_v26, %v1772_v24  ;;  %v1702_v57 = vadd.f32 %v1701_v25, %v1700_v23  ;;  %v1599_v23 = vunpack.c.h.bf16 %v1597_v56  ;;  %v1610_v24 = vunpack.c.l.bf16 %v1662_v11 }
 0x105   : > { %v1703_v28 = vpop.f32.mrf.mxu0  ;;  %v1775_v29 = vpop.f32.mrf.mxu1 }
 0x107   : > { %v1704_v30 = vpop.f32.mrf.mxu0  ;;  %v1776_v31 = vpop.f32.mrf.mxu1 }
 0x108   : > { %v2324_v32 = vadd.f32 %v1776_v31, %v1775_v29  ;;  %v1705_v19 = vadd.f32 %v1704_v30, %v1703_v28  ;;  %v1661_v29 = vld [vmem:[%s2342_s7 + $0x10] sm:$0xff]  }
 0x109   : > { %v2326_v33 = vpop.f32.mrf.mxu0  ;;  %v1778_v34 = vpop.f32.mrf.mxu1  ;;  %v1606_v50 = vunpack.c.l.bf16 %v1661_v29 }
 0x10b   : > { %v2328_v35 = vpop.f32.mrf.mxu0  ;;  %v1779_v36 = vpop.f32.mrf.mxu1 }
 0x10c   : > { %v2330_v37 = vadd.f32 %v1779_v36, %v1778_v34 }
 0x10d   : > { %v1709_v38 = vpop.f32.mrf.mxu0  ;;  %v2332_v39 = vpop.f32.mrf.mxu1 }
 0x10f   : > { %v1710_v40 = vpop.f32.mrf.mxu0  ;;  %v2334_v41 = vpop.f32.mrf.mxu1 }
 0x110   : > { %v1711_v7 = vadd.f32 %v1710_v40, %v1709_v38 }
 0x111   : > { %v1712_v42 = vpop.f32.mrf.mxu0  ;;  %v2337_v43 = vpop.f32.mrf.mxu1 }
 0x113   : > { %v1713_v44 = vpop.f32.mrf.mxu0  ;;  %v2344_v45 = vpop.f32.mrf.mxu1 }
 0x114   : > { %v1714_v31 = vadd.f32 %v1713_v44, %v1712_v42  ;;  %v1708_v42 = vadd.f32 %v2328_v35, %v2326_v33 }
 0x115   : > { %v2346_v47 = vpop.f32.mrf.mxu0  ;;  %v1829_v48 = vpop.f32.mrf.mxu1 }
 0x116   : > { %v1038_v52 = vadd.f32 %v1829_v48, %v1699_v46 }
 0x117   : > { %v2360_v54 = vpop.f32.mrf.mxu0  ;;  %v1029_v55 = vpop.f32.mrf.mxu1 }
 0x118   : > { %v1165_v58 = vmul.f32 %v2352_v49, %v1038_v52  ;;  %v1030_v60 = vadd.f32 %v1693_v51, %v1029_v55  ;;  %v1611_v52 = vunpack.c.h.bf16 %v1662_v11  ;;  %v1717_v33 = vadd.f32 %v2360_v54, %v2346_v47 }
 0x119   : > { %v2366_v61 = vpop.f32.mrf.mxu0  ;;  %v1830_v62 = vpop.f32.mrf.mxu1 }
 0x11a   : > { %v1204_v63 = vadd.f32 %v2358_v53, %v1165_v58  ;;  %v1163_v0 = vmul.f32 %v2352_v49, %v1030_v60  ;;  %v1041_v2 = vadd.f32 %v1830_v62, %v1702_v57  ;;  %v1664_v62 = vld [vmem:[%s2342_s7 + $0x28] sm:$0xff]  }
 0x11b   : > { %v2370_v5 = vpop.f32.mrf.mxu0  ;;  %v1032_v6 = vpop.f32.mrf.mxu1 }
 0x11c   : > { %v1300_v8 = vadd.f32 %v1602_v59, %v1204_v63  ;;  %v1202_v9 = vadd.f32 %v2358_v53, %v1163_v0  ;;  %v1166_v10 = vmul.f32 %v2352_v49, %v1041_v2  ;;  %v1033_v14 = vadd.f32 %v1696_v3, %v1032_v6 }
 0x11d   : > { %v1721_v16 = vpop.f32.mrf.mxu0  ;;  %v1833_v18 = vpop.f32.mrf.mxu1  ;;  %v1607_v6 = vunpack.c.h.bf16 %v1661_v29 }
 0x11e   : > { %1332 = vst [vmem:[%s2375_s14 + $0x10] sm:$0xff] %v1300_v8  ;;  %v1298_v13 = vadd.f32 %v1598_v1, %v1202_v9  ;;  %v1205_v15 = vadd.f32 %v2358_v53, %v1166_v10  ;;  %v1054_v20 = vadd.f32 %v1833_v18, %v1711_v7  ;;  %v1164_v21 = vmul.f32 %v2352_v49, %v1033_v14  ;;  %v1663_v10 = vld [vmem:[%s2342_s7 + $0x20] sm:$0xff]  }
 0x11f   : > { %v1722_v25 = vpop.f32.mrf.mxu0  ;;  %v1045_v26 = vpop.f32.mrf.mxu1  ;;  %v1618_v7 = vunpack.c.l.bf16 %v1664_v62 }
 0x120   : > { %1330 = vst [vmem:[%s2375_s14] sm:$0xff] %v1298_v13  ;;  %v1301_v28 = vadd.f32 %v1603_v4, %v1205_v15  ;;  %v1169_v30 = vmul.f32 %v2352_v49, %v1054_v20  ;;  %v1046_v34 = vadd.f32 %v1705_v19, %v1045_v26  ;;  %v1203_v36 = vadd.f32 %v2358_v53, %v1164_v21 }
 0x121   : > { %v1724_v38 = vpop.f32.mrf.mxu0  ;;  %v1834_v40 = vpop.f32.mrf.mxu1  ;;  %v1723_v58 = vadd.f32 %v1722_v25, %v1721_v16  ;;  %v1614_v20 = vunpack.c.l.bf16 %v1663_v10 }
 0x122   : > { %1333 = vst [vmem:[%s2375_s14 + $0x18] sm:$0xff] %v1301_v28  ;;  %v1208_v46 = vadd.f32 %v2358_v53, %v1169_v30  ;;  %v1167_v48 = vmul.f32 %v2352_v49, %v1046_v34  ;;  %v1057_v51 = vadd.f32 %v1834_v40, %v1714_v31  ;;  %v1299_v44 = vadd.f32 %v1599_v23, %v1203_v36 }
 0x123   : > { %v1725_v55 = vpop.f32.mrf.mxu0  ;;  %v1048_v56 = vpop.f32.mrf.mxu1  ;;  %v1720_v23 = vadd.f32 %v2370_v5, %v2366_v61  ;;  %v1619_v30 = vunpack.c.h.bf16 %v1664_v62 }
 0x124   : > { %v1304_v57 = vadd.f32 %v1610_v24, %v1208_v46  ;;  %v1206_v59 = vadd.f32 %v2358_v53, %v1167_v48  ;;  %v1170_v60 = vmul.f32 %v2352_v49, %v1057_v51  ;;  %1331 = vst [vmem:[%s2375_s14 + $0x8] sm:$0xff] %v1299_v44  ;;  %v1049_v63 = vadd.f32 %v1708_v42, %v1048_v56  ;;  %v1665_v42 = vld [vmem:[%s2342_s7 + $0x30] sm:$0xff]  }
 0x125   : > { %v1727_v0 = vpop.f32.mrf.mxu0  ;;  %v1837_v1 = vpop.f32.mrf.mxu1  ;;  %v1726_v14 = vadd.f32 %v1725_v55, %v1724_v38  ;;  %v1615_v48 = vunpack.c.h.bf16 %v1663_v10  ;;  %v1666_v55 = vld [vmem:[%s2342_s7 + $0x38] sm:$0xff]  }
 0x126   : > { %1336 = vst [vmem:[%s2375_s14 + $0x30] sm:$0xff] %v1304_v57  ;;  %v1302_v35 = vadd.f32 %v1606_v50, %v1206_v59  ;;  %v1209_v2 = vadd.f32 %v2358_v53, %v1170_v60  ;;  %v1070_v3 = vadd.f32 %v1837_v1, %v1723_v58  ;;  %v1168_v4 = vmul.f32 %v2352_v49, %v1049_v63 }
 0x127   : > { %v1728_v8 = vpop.f32.mrf.mxu0  ;;  %v1061_v9 = vpop.f32.mrf.mxu1 }
 0x128   : > { %1334 = vst [vmem:[%s2375_s14 + $0x20] sm:$0xff] %v1302_v35  ;;  %v1305_v11 = vadd.f32 %v1611_v52, %v1209_v2  ;;  %v1173_v16 = vmul.f32 %v2352_v49, %v1070_v3  ;;  %v1062_v18 = vadd.f32 %v1717_v33, %v1061_v9  ;;  %v1207_v47 = vadd.f32 %v2358_v53, %v1168_v4 }
 0x129   : > { %v1730_v54 = vpop.f32.mrf.mxu0  ;;  %v1838_v19 = vpop.f32.mrf.mxu1  ;;  %v1729_v40 = vadd.f32 %v1728_v8, %v1727_v0  ;;  %v1622_v0 = vunpack.c.l.bf16 %v1665_v42  ;;  %v1626_v33 = vunpack.c.l.bf16 %v1666_v55  ;;  %v1623_v8 = vunpack.c.h.bf16 %v1665_v42 }
 0x12a   : > { %1337 = vst [vmem:[%s2375_s14 + $0x38] sm:$0xff] %v1305_v11  ;;  %v1212_v13 = vadd.f32 %v2358_v53, %v1173_v16  ;;  %v1171_v15 = vmul.f32 %v2352_v49, %v1062_v18  ;;  %v1073_v21 = vadd.f32 %v1838_v19, %v1726_v14  ;;  %v1303_v24 = vadd.f32 %v1607_v6, %v1207_v47 }
 0x12b   : > { %v1731_v25 = vpop.f32.mrf.mxu0  ;;  %v1064_v26 = vpop.f32.mrf.mxu1  ;;  %v1627_v47 = vunpack.c.h.bf16 %v1666_v55 }
 0x12c   : > { %v1308_v29 = vadd.f32 %v1618_v7, %v1212_v13  ;;  %v1210_v31 = vadd.f32 %v2358_v53, %v1171_v15  ;;  %v1174_v28 = vmul.f32 %v2352_v49, %v1073_v21  ;;  %1335 = vst [vmem:[%s2375_s14 + $0x28] sm:$0xff] %v1303_v24  ;;  %v1065_v34 = vadd.f32 %v1720_v23, %v1064_v26  ;;  %v1667_v23 = vld [vmem:[%s2342_s7 + $0x40] sm:$0xff]  }
 0x12d   : > { %v1733_v36 = vpop.f32.mrf.mxu0  ;;  %v1841_v38 = vpop.f32.mrf.mxu1  ;;  %v1732_v60 = vadd.f32 %v1731_v25, %v1730_v54 }
 0x12e   : > { %1340 = vst [vmem:[%s2375_s14 + $0x50] sm:$0xff] %v1308_v29  ;;  %v1306_v61 = vadd.f32 %v1614_v20, %v1210_v31  ;;  %v1213_v5 = vadd.f32 %v2358_v53, %v1174_v28  ;;  %v1172_v46 = vmul.f32 %v2352_v49, %v1065_v34 }
 0x12f   : > { %v1734_v50 = vpop.f32.mrf.mxu0  ;;  %v1077_v51 = vpop.f32.mrf.mxu1 }
 0x130   : > { %1338 = vst [vmem:[%s2375_s14 + $0x40] sm:$0xff] %v1306_v61  ;;  %v1309_v44 = vadd.f32 %v1619_v30, %v1213_v5  ;;  %v1735_v52 = vadd.f32 %v1734_v50, %v1733_v36  ;;  %v1078_v56 = vadd.f32 %v1729_v40, %v1077_v51  ;;  %v1211_v57 = vadd.f32 %v2358_v53, %v1172_v46 }
 0x131   : > { %v1736_v58 = vpop.f32.mrf.mxu0  ;;  %v1842_v59 = vpop.f32.mrf.mxu1 }
 0x132   : > { %1341 = vst [vmem:[%s2375_s14 + $0x58] sm:$0xff] %v1309_v44  ;;  %v1086_v62 = vadd.f32 %v1841_v38, %v1735_v52  ;;  %v1175_v63 = vmul.f32 %v2352_v49, %v1078_v56  ;;  %v1307_v1 = vadd.f32 %v1615_v48, %v1211_v57  ;;  %v1630_v38 = vunpack.c.l.bf16 %v1667_v23  ;;  %v1668_v56 = vld [vmem:[%s2342_s7 + $0x48] sm:$0xff]  }
 0x133   : > { %v1737_v35 = vpop.f32.mrf.mxu0  ;;  %v1080_v2 = vpop.f32.mrf.mxu1  ;;  %v1631_v52 = vunpack.c.h.bf16 %v1667_v23 }
 0x134   : > { %v1177_v3 = vmul.f32 %v2352_v49, %v1086_v62  ;;  %v1214_v4 = vadd.f32 %v2358_v53, %v1175_v63  ;;  %v1738_v6 = vadd.f32 %v1737_v35, %v1736_v58  ;;  %v1081_v7 = vadd.f32 %v1732_v60, %v1080_v2  ;;  %1339 = vst [vmem:[%s2375_s14 + $0x48] sm:$0xff] %v1307_v1  ;;  %v1672_v2 = vld [vmem:[%s2342_s7 + $0x68] sm:$0xff]  }
 0x135   : > { %v1739_v9 = vpop.f32.mrf.mxu0  ;;  %v1845_v10 = vpop.f32.mrf.mxu1 }
 0x136   : > { %v1216_v11 = vadd.f32 %v2358_v53, %v1177_v3  ;;  %v1310_v14 = vadd.f32 %v1622_v0, %v1214_v4  ;;  %v1089_v16 = vadd.f32 %v1842_v59, %v1738_v6  ;;  %v1176_v18 = vmul.f32 %v2352_v49, %v1081_v7 }
 0x137   : > { %v1740_v54 = vpop.f32.mrf.mxu0  ;;  %v1093_v19 = vpop.f32.mrf.mxu1 }
 0x138   : > { %v1312_v13 = vadd.f32 %v1626_v33, %v1216_v11  ;;  %1342 = vst [vmem:[%s2375_s14 + $0x60] sm:$0xff] %v1310_v14  ;;  %v1178_v15 = vmul.f32 %v2352_v49, %v1089_v16  ;;  %v1215_v20 = vadd.f32 %v2358_v53, %v1176_v18  ;;  %v1741_v21 = vadd.f32 %v1740_v54, %v1739_v9  ;;  %v2448_v9 = vld [vmem:[%s2342_s7 + $0x50] sm:$0xff]  }
 0x139   : > { %v1742_v24 = vpop.f32.mrf.mxu0  ;;  %v1846_v25 = vpop.f32.mrf.mxu1  ;;  %v1634_v33 = vunpack.c.l.bf16 %v1668_v56  ;;  %v1635_v11 = vunpack.c.h.bf16 %v1668_v56  ;;  %v1650_v14 = vunpack.c.l.bf16 %v1672_v2 }
 0x13a   : > { %1344 = vst [vmem:[%s2375_s14 + $0x70] sm:$0xff] %v1312_v13  ;;  %v1217_v26 = vadd.f32 %v2358_v53, %v1178_v15  ;;  %v1311_v29 = vadd.f32 %v1623_v8, %v1215_v20  ;;  %v1094_v31 = vadd.f32 %v1741_v21, %v1093_v19  ;;  %v1638_v15 = vunpack.c.l.bf16 %v2448_v9 }
 0x13b   : > { %v1743_v28 = vpop.f32.mrf.mxu0  ;;  %v1096_v30 = vpop.f32.mrf.mxu1 }
 0x13c   : > { %v1313_v34 = vadd.f32 %v1627_v47, %v1217_v26  ;;  %1343 = vst [vmem:[%s2375_s14 + $0x68] sm:$0xff] %v1311_v29  ;;  %v1179_v36 = vmul.f32 %v2352_v49, %v1094_v31  ;;  %v1744_v40 = vadd.f32 %v1743_v28, %v1742_v24  ;;  %v1783_v31 = vadd.f32 %v2334_v41, %v2332_v39 }
 0x13d   : > { %v1745_v61 = vpop.f32.mrf.mxu0  ;;  %v2432_v5 = vpop.f32.mrf.mxu1 }
 0x13e   : > { %1345 = vst [vmem:[%s2375_s14 + $0x78] sm:$0xff] %v1313_v34  ;;  %v1218_v46 = vadd.f32 %v2358_v53, %v1179_v36  ;;  %v1097_v48 = vadd.f32 %v1744_v40, %v1096_v30  ;;  %v1651_v30 = vunpack.c.h.bf16 %v1672_v2 }
 0x13f   : > { %v1746_v50 = vpop.f32.mrf.mxu0  ;;  %v1109_v51 = vpop.f32.mrf.mxu1 }
 0x140   : > { %v1314_v42 = vadd.f32 %v1630_v38, %v1218_v46  ;;  %v1180_v44 = vmul.f32 %v2352_v49, %v1097_v48  ;;  %v1747_v55 = vadd.f32 %v1746_v50, %v1745_v61  ;;  %v2467_v38 = vld [vmem:[%s2342_s7 + $0x78] sm:$0xff]   ;;  %v1639_v48 = vunpack.c.h.bf16 %v2448_v9 }
 0x141   : > { %v1748_v57 = vpop.f32.mrf.mxu0  ;;  %v2438_v58 = vpop.f32.mrf.mxu1  ;;  %v1658_v56 = vunpack.c.l.bf16 %v2467_v38 }
 0x142   : > { %1346 = vst [vmem:[%s2375_s14 + $0x80] sm:$0xff] %v1314_v42  ;;  %v1219_v59 = vadd.f32 %v2358_v53, %v1180_v44  ;;  %v1102_v60 = vadd.f32 %v1845_v10, %v1747_v55  ;;  %v2451_v10 = vld [vmem:[%s2342_s7 + $0x60] sm:$0xff]  }
 0x143   : > { %v1749_v62 = vpop.f32.mrf.mxu0  ;;  %v1112_v63 = vpop.f32.mrf.mxu1  ;;  %v1646_v20 = vunpack.c.l.bf16 %v2451_v10  ;;  %v1647_v36 = vunpack.c.h.bf16 %v2451_v10 }
 0x144   : > { %v1315_v0 = vadd.f32 %v1631_v52, %v1219_v59  ;;  %v1181_v1 = vmul.f32 %v2352_v49, %v1102_v60  ;;  %v1750_v35 = vadd.f32 %v1749_v62, %v1748_v57  ;;  %v1673_v57 = vld [vmem:[%s2342_s7 + $0x70] sm:$0xff]   ;;  %v1786_v59 = vadd.f32 %v2344_v45, %v2337_v43 }
 0x145   : > { %v1751_v3 = vpop.f32.mrf.mxu0  ;;  %v1853_v4 = vpop.f32.mrf.mxu1  ;;  %v1654_v45 = vunpack.c.l.bf16 %v1673_v57 }
 0x146   : > { %1347 = vst [vmem:[%s2375_s14 + $0x88] sm:$0xff] %v1315_v0  ;;  %v1220_v6 = vadd.f32 %v2358_v53, %v1181_v1  ;;  %v1105_v7 = vadd.f32 %v1846_v25, %v1750_v35  ;;  %v1134_v8 = vadd.f32 %v1853_v4, %v2320_v22  ;;  %v1670_v1 = vld [vmem:[%s2342_s7 + $0x58] sm:$0xff]   ;;  %s2025_s7 = sshll.u32 %s2099_s29, 4  ;;  %s2026_s7 = int_to_ptr.vmem [resolvable:$false] %s2025_s7 }
 0x147   : > { %v1752_v16 = vpop.f32.mrf.mxu0  ;;  %v1125_v18 = vpop.f32.mrf.mxu1  ;;  %s2027_s9 = scalar_lea.vmem %s2026_s7, 8192  ;;  %p2028_p1 = scmp.lt.s32.totalorder %s2520_s17, %s2026_s7 }
 0x148   : > { %v1316_v47 = vadd.f32 %v1634_v33, %v1220_v6  ;;  %v1182_v54 = vmul.f32 %v2352_v49, %v1105_v7  ;;  %v1189_v19 = vmul.f32 %v2352_v49, %v1134_v8  ;;  %v1753_v13 = vadd.f32 %v1752_v16, %v1751_v3  ;;  %p2029_p2 = scmp.lt.s32.totalorder %s2027_s9, %s2021_s27 }
 0x149   : > { %v1126_v22 = vadd.f32 %v2316_v12, %v1125_v18  ;;  %v1754_v21 = vpop.f32.mrf.mxu0  ;;  %v1854_v23 = vpop.f32.mrf.mxu1 }
 0x14a   : > { %1348 = vst [vmem:[%s2375_s14 + $0x90] sm:$0xff] %v1316_v47  ;;  %v1221_v24 = vadd.f32 %v2358_v53, %v1182_v54  ;;  %v1228_v25 = vadd.f32 %v2358_v53, %v1189_v19  ;;  %v1110_v26 = vadd.f32 %v1753_v13, %v1109_v51  ;;  %v1137_v29 = vadd.f32 %v1854_v23, %v2322_v27  ;;  %p2030_p3 = por %p2029_p2, %p2028_p1 }
 0x14b   : > { %v1187_v28 = vmul.f32 %v2352_v49, %v1126_v22  ;;  %v1755_v12 = vpop.f32.mrf.mxu0  ;;  %v1128_v34 = vpop.f32.mrf.mxu1 }
 0x14c   : > { %v1317_v40 = vadd.f32 %v1635_v11, %v1221_v24  ;;  %v1324_v61 = vadd.f32 %v1650_v14, %v1228_v25  ;;  %v1183_v46 = vmul.f32 %v2352_v49, %v1110_v26  ;;  %v1190_v27 = vmul.f32 %v2352_v49, %v1137_v29  ;;  %p2031_p5 = pnand %p2030_p3, %p2024_p0 }
 0x14d   : > { %v1226_v39 = vadd.f32 %v2358_v53, %v1187_v28  ;;  %v1756_v41 = vadd.f32 %v1755_v12, %v1754_v21  ;;  %v1129_v50 = vadd.f32 %v2318_v17, %v1128_v34  ;;  %v1757_v51 = vpop.f32.mrf.mxu0  ;;  %v1857_v42 = vpop.f32.mrf.mxu1  ;;  %v1642_v11 = vunpack.c.l.bf16 %v1670_v1 }
 0x14e   : > { %1349 = vst [vmem:[%s2375_s14 + $0x98] sm:$0xff] %v1317_v40  ;;  %1356 = vst [vmem:[%s2375_s14 + $0xd0] sm:$0xff] %v1324_v61  ;;  %v1222_v44 = vadd.f32 %v2358_v53, %v1183_v46  ;;  %v1229_v52 = vadd.f32 %v2358_v53, %v1190_v27  ;;  %v1150_v55 = vadd.f32 %v1857_v42, %v1783_v31  ;;  %v1655_v28 = vunpack.c.h.bf16 %v1673_v57 }
 0x14f   : > { %v1322_v60 = vadd.f32 %v1646_v20, %v1226_v39  ;;  %v1113_v62 = vadd.f32 %v1756_v41, %v1112_v63  ;;  %v1188_v17 = vmul.f32 %v2352_v49, %v1129_v50  ;;  %v1758_v0 = vpop.f32.mrf.mxu0  ;;  %v1141_v33 = vpop.f32.mrf.mxu1  ;;  %v1643_v34 = vunpack.c.h.bf16 %v1670_v1 }
 0x150   : > { %v1318_v35 = vadd.f32 %v1638_v15, %v1222_v44  ;;  %v1325_v2 = vadd.f32 %v1651_v30, %v1229_v52  ;;  %v1193_v3 = vmul.f32 %v2352_v49, %v1150_v55  ;;  %v1759_v4 = vadd.f32 %v1758_v0, %v1757_v51 }
 0x151   : > { %1354 = vst [vmem:[%s2375_s14 + $0xc0] sm:$0xff] %v1322_v60  ;;  %v1184_v6 = vmul.f32 %v2352_v49, %v1113_v62  ;;  %v1227_v7 = vadd.f32 %v2358_v53, %v1188_v17  ;;  %v1142_v43 = vadd.f32 %v2324_v32, %v1141_v33  ;;  %v1760_v63 = vpop.f32.mrf.mxu0  ;;  %v1858_v8 = vpop.f32.mrf.mxu1  ;;  %v1659_v32 = vunpack.c.h.bf16 %v2467_v38 }
 0x152   : > { %1350 = vst [vmem:[%s2375_s14 + $0xa0] sm:$0xff] %v1318_v35  ;;  %1357 = vst [vmem:[%s2375_s14 + $0xd8] sm:$0xff] %v1325_v2  ;;  %v1232_v9 = vadd.f32 %v2358_v53, %v1193_v3  ;;  %v1118_v10 = vadd.f32 %v2432_v5, %v1759_v4  ;;  %v1153_v14 = vadd.f32 %v1858_v8, %v1786_v59 }
 0x153   : > { %v1223_v16 = vadd.f32 %v2358_v53, %v1184_v6  ;;  %v1323_v18 = vadd.f32 %v1647_v36, %v1227_v7  ;;  %v1191_v47 = vmul.f32 %v2352_v49, %v1142_v43  ;;  %v1761_v54 = vpop.f32.mrf.mxu0  ;;  %v1144_v19 = vpop.f32.mrf.mxu1 }
 0x154   : > { %v1328_v13 = vadd.f32 %v1658_v56, %v1232_v9  ;;  %v1185_v15 = vmul.f32 %v2352_v49, %v1118_v10  ;;  %v1194_v22 = vmul.f32 %v2352_v49, %v1153_v14  ;;  %v1762_v20 = vadd.f32 %v1761_v54, %v1760_v63 }
 0x155   : > { %v1319_v5 = vadd.f32 %v1639_v48, %v1223_v16  ;;  %1355 = vst [vmem:[%s2375_s14 + $0xc8] sm:$0xff] %v1323_v18  ;;  %v1230_v21 = vadd.f32 %v2358_v53, %v1191_v47  ;;  %v1145_v23 = vadd.f32 %v2330_v37, %v1144_v19 }
 0x156   : > { %1360 = vst [vmem:[%s2375_s14 + $0xf0] sm:$0xff] %v1328_v13  ;;  %v1224_v24 = vadd.f32 %v2358_v53, %v1185_v15  ;;  %v1233_v25 = vadd.f32 %v2358_v53, %v1194_v22  ;;  %v1121_v26 = vadd.f32 %v2438_v58, %v1762_v20 }
 0x157   : > { %1351 = vst [vmem:[%s2375_s14 + $0xa8] sm:$0xff] %v1319_v5  ;;  %v1326_v29 = vadd.f32 %v1654_v45, %v1230_v21  ;;  %v1192_v31 = vmul.f32 %v2352_v49, %v1145_v23 }
 0x158   : > { %v1320_v30 = vadd.f32 %v1642_v11, %v1224_v24  ;;  %v1329_v12 = vadd.f32 %v1659_v32, %v1233_v25  ;;  %v1186_v37 = vmul.f32 %v2352_v49, %v1121_v26 }
 0x159   : > { %1358 = vst [vmem:[%s2375_s14 + $0xe0] sm:$0xff] %v1326_v29  ;;  %v1231_v36 = vadd.f32 %v2358_v53, %v1192_v31 }
 0x15a   : > { %1352 = vst [vmem:[%s2375_s14 + $0xb0] sm:$0xff] %v1320_v30  ;;  %1361 = vst [vmem:[%s2375_s14 + $0xf8] sm:$0xff] %v1329_v12  ;;  %v1225_v58 = vadd.f32 %v2358_v53, %v1186_v37 }
 0x15b   : > { %v1327_v38 = vadd.f32 %v1655_v28, %v1231_v36 }
 0x15c   : > { %v1321_v49 = vadd.f32 %v1643_v34, %v1225_v58 }
 0x15d   : > { %1359 = vst [vmem:[%s2375_s14 + $0xe8] sm:$0xff] %v1327_v38 }
 0x15e   : > { %1353 = vst [vmem:[%s2375_s14 + $0xb8] sm:$0xff] %v1321_v49 }
 0x15f   : > { %2034 = shalt.err (!%p2031_p5)
}
 0x160   : > { %s2035_s8 = scalar_lea.hbm %s2518_s15, 4096  ;;  %s2039_s12 = scalar_lea.hbm %s2576_s5, 8192 }
 0x161   : > { %p2036_p6 = scmp.ne.s32.totalorder %s2518_s15, %s2035_s8  ;;  %p2040_p10 = scmp.lt.s32.totalorder %s2518_s15, %s2576_s5 }
 0x162   : > { %p2041_p11 = scmp.lt.s32.totalorder %s2039_s12, %s2035_s8 }
 0x163   : > { %p2037_p7 = pnand %p2036_p6, %p2172_p4 }
 0x164   : > { %p2042_p12 = por %p2041_p11, %p2040_p10 }
 0x165   : > { %p2038_p9 = pneg %p2037_p7 }
 0x167   : > { %p2043_p13 = pnand %p2042_p12, %p2038_p9 }
 0x169   : > { %2046 = shalt.err (!%p2043_p13)
}
 0x16a   : > { %s2100_s16 = smov 128   ;;  %s2101_s24 = smov 8  }
 0x16b   : > { %1876 = dma.vmem_to_hbm [thread:$0]  (%p2172_p4), %s2520_s17, 4096, %s2518_s15, %s2526_s21, %s2100_s16, %s2100_s16, %s2101_s24  }
 0x16c PF: > { %p1882_p0 = scmp.ge.s32.totalorder %s2097_s23, 2  ;;  %s1392_s25 = sand.u32 1, %s2077_s18  }
 0x16d   : > { %s1393_s27 = scalar_lea.sflag [#allocation3], %s1392_s25 }
 0x16e   : > { %p1879_p1 = pnand %p1882_p0, %p2179_p8 }
 0x170   : > { %p1880_p2 = pneg %p1879_p1 }
 0x172   : > { %2072 = dma.done.wait (%p1880_p2), %s1393_s27, 4096  }
 0x173   : > { %2074 = vsyncadd (%p1880_p2), %s1393_s27, 4294963200  ;;  %s18_s23 = sadd.s32 1, %s2097_s23   ;;  %s2579_s18 = smov %s2081_s19 }
 0x174   : > { %p15_p3 = scmp.ge.s32.totalorder %s18_s23, 4   ;;  %s2580_s19 = smov %s2085_s20 }
 0x175   : > { %s2581_s20 = smov %s2185_s6  ;;  %s2582_s21 = smov %s2093_s22 }
 0x176   : > { %s2583_s22 = smov %s2585_s26  ;;  %17 = sbr.rel (!%p15_p3) target bundleno = 4 (0x4), region = 87 }
 0x17b   :  { %1398 = vsyncpa [#allocation3], 1 }
 0x17c   :  { %1400 = vsyncpa [#allocation3 + $0x1], 1 }

</bundles_post_ra>
